<compile_context>
chip_gen: v7x
topology: tpu7x:2x2x1
jax: 0.10.0
libtpu: 0.0.40
codegen_flags: <defaults>
</compile_context>

<pallas_src>
import math

import jax
import jax.numpy as jnp
from jax.experimental import pallas as pl
from jax.experimental.pallas import tpu as pltpu

_NEG_SLOPE = 0.01  # PyTorch nn.LeakyReLU default


def _round_up(x, m):
    return ((x + m - 1) // m) * m


def _cdiv(a, b):
    return -(-a // b)


def _choose_tiling(batch, *, granule=16, max_tile=512):
    """Pad the batch to the bf16 sublane granule and pick a batch tile:
      - tiny batches: one small tile (no useless padding work),
      - larger batches: >= 2 grid steps (megacore sharding on v7x), tiles up
        to `max_tile` rows to amortize per-step pipeline overhead."""
    b_pad = _round_up(max(batch, 1), granule)
    if b_pad <= granule:
        return b_pad, b_pad
    n_steps = max(2, _cdiv(b_pad, max_tile))
    tile = _round_up(_cdiv(b_pad, n_steps), granule)
    b_pad = _round_up(b_pad, tile)
    return b_pad, tile


def _make_net1_kernel(epilogue_dtype):
    """Kernel body. bf16 matmuls on the MXU with f32 accumulation; bias-add +
    LeakyReLU in `epilogue_dtype` (bf16 on v6e/v7x, f32 on v5e)."""

    def kernel(x_ref,
               w1_ref, b1_ref,
               w2_ref, b2_ref,
               w3_ref, b3_ref,
               w4_ref, b4_ref,
               out_ref):
        def dense_lrelu(h, w_ref, b_ref):
            acc = jnp.dot(h, w_ref[...], preferred_element_type=jnp.float32)
            v = acc.astype(epilogue_dtype) + b_ref[...]
            v = jnp.maximum(v, _NEG_SLOPE * v)          # LeakyReLU
            return v.astype(jnp.bfloat16)                # next MXU input

        h = dense_lrelu(x_ref[...], w1_ref, b1_ref)
        h = dense_lrelu(h, w2_ref, b2_ref)
        h = dense_lrelu(h, w3_ref, b3_ref)
        out = jnp.dot(h, w4_ref[...], preferred_element_type=jnp.float32)
        out_ref[...] = (out + b4_ref[...]).astype(out_ref.dtype)

    return kernel


def prepare_params(params, *, bf16_epilogue=True):
    """One-time conversion of f32 (in,out)/(1,out) params into kernel-ready
    arrays: bf16 weights, epilogue-dtype biases, final layer zero-padded to a
    128-lane-aligned width (lane-dense output stores)."""
    bf16 = jnp.bfloat16
    ep_dt = bf16 if bf16_epilogue else jnp.float32
    pc_num = params["w4"].shape[1]
    pc_pad = _round_up(pc_num, 128)

    w4 = jnp.zeros((params["w4"].shape[0], pc_pad), bf16)
    w4 = w4.at[:, :pc_num].set(params["w4"].astype(bf16))
    b4 = jnp.zeros((1, pc_pad), jnp.float32)
    b4 = b4.at[:, :pc_num].set(params["b4"].astype(jnp.float32))

    return dict(
        w1=params["w1"].astype(bf16), b1=params["b1"].astype(ep_dt),
        w2=params["w2"].astype(bf16), b2=params["b2"].astype(ep_dt),
        w3=params["w3"].astype(bf16), b3=params["b3"].astype(ep_dt),
        w4=w4, b4=b4,
        pc_num=pc_num, pc_pad=pc_pad, bf16_epilogue=bf16_epilogue,
    )


def net1_forward(x, prepared, *, max_batch_tile=512):
    """x: (B, FM_num*3) float array. prepared: output of prepare_params()."""
    B, in_dim = x.shape
    pc_num, pc_pad = prepared["pc_num"], prepared["pc_pad"]
    ep_dt = jnp.bfloat16 if prepared["bf16_epilogue"] else jnp.float32

    b_pad, tb = _choose_tiling(B, max_tile=max_batch_tile)

    # Cast to the MXU input dtype and pad the batch in the wrapper.
    x_bf16 = x.astype(jnp.bfloat16)
    if b_pad != B:
        x_bf16 = jnp.zeros((b_pad, in_dim), jnp.bfloat16).at[:B].set(x_bf16)

    grid = (b_pad // tb,)

    def batch_map(i):
        return (i, 0)

    def resident_map(i):
        return (0, 0)

    w1, b1 = prepared["w1"], prepared["b1"]
    w2, b2 = prepared["w2"], prepared["b2"]
    w3, b3 = prepared["w3"], prepared["b3"]
    w4, b4 = prepared["w4"], prepared["b4"]

    in_specs = [
        pl.BlockSpec((tb, in_dim), batch_map),
        pl.BlockSpec(w1.shape, resident_map),
        pl.BlockSpec(b1.shape, resident_map),
        pl.BlockSpec(w2.shape, resident_map),
        pl.BlockSpec(b2.shape, resident_map),
        pl.BlockSpec(w3.shape, resident_map),
        pl.BlockSpec(b3.shape, resident_map),
        pl.BlockSpec(w4.shape, resident_map),
        pl.BlockSpec(b4.shape, resident_map),
    ]
    out_spec = pl.BlockSpec((tb, pc_pad), batch_map)

    # Advisory cost estimate using the real (unpadded) workload.
    flops = 2 * B * (w1.shape[0] * w1.shape[1]
                     + w2.shape[0] * w2.shape[1]
                     + w3.shape[0] * w3.shape[1]
                     + w4.shape[0] * pc_num)
    weight_bytes = sum(int(prepared[k].size) * prepared[k].dtype.itemsize
                       for k in ("w1", "w2", "w3", "w4", "b1", "b2", "b3", "b4"))
    bytes_accessed = B * in_dim * 2 + weight_bytes + B * pc_num * 2

    out = pl.pallas_call(
        _make_net1_kernel(ep_dt),
        out_shape=jax.ShapeDtypeStruct((b_pad, pc_pad), jnp.bfloat16),
        grid=grid,
        in_specs=in_specs,
        out_specs=out_spec,
        compiler_params=pltpu.CompilerParams(
            dimension_semantics=("parallel",),
            vmem_limit_bytes=32 * 1024 * 1024),
        cost_estimate=pl.CostEstimate(
            flops=flops, transcendentals=0, bytes_accessed=bytes_accessed),
    )(x_bf16, w1, b1, w2, b2, w3, b3, w4, b4)

    return out[:B, :pc_num].astype(jnp.float32)


def init_net1_params(key, fm_num, pc_num):
    """PyTorch nn.Linear-style init: U(-1/sqrt(fan_in), 1/sqrt(fan_in)).
    Weights stored as (in, out); biases as (1, out)."""
    dims = [fm_num * 3, 1024, 512, 256, pc_num]
    params = {}
    for i in range(4):
        fan_in, fan_out = dims[i], dims[i + 1]
        bound = 1.0 / math.sqrt(fan_in)
        key, kw, kb = jax.random.split(key, 3)
        params[f"w{i + 1}"] = jax.random.uniform(
            kw, (fan_in, fan_out), jnp.float32, minval=-bound, maxval=bound)
        params[f"b{i + 1}"] = jax.random.uniform(
            kb, (1, fan_out), jnp.float32, minval=-bound, maxval=bound)
    return params


def net1_reference(x, params, *, bf16_epilogue=True):
    """Plain-JAX reference mirroring the kernel recipe (bf16 matmuls, f32
    accumulation, epilogue dtype, bf16 output store)."""
    bf16 = jnp.bfloat16
    ep_dt = bf16 if bf16_epilogue else jnp.float32

    def dense_lrelu(h, w, b):
        acc = jnp.dot(h.astype(bf16), w.astype(bf16),
                      preferred_element_type=jnp.float32)
        v = acc.astype(ep_dt) + b.astype(ep_dt)
        v = jnp.maximum(v, _NEG_SLOPE * v)
        return v.astype(bf16)

    h = dense_lrelu(x, params["w1"], params["b1"])
    h = dense_lrelu(h, params["w2"], params["b2"])
    h = dense_lrelu(h, params["w3"], params["b3"])
    out = jnp.dot(h, params["w4"].astype(bf16),
                  preferred_element_type=jnp.float32) + params["b4"]
    return out.astype(bf16).astype(jnp.float32)


if __name__ == "__main__":
    FM_num = 5      # -> input dim 15
    PC_num = 16
    batch = 8

    key = jax.random.PRNGKey(0)
    key, kx = jax.random.split(key)
    x = jax.random.normal(kx, (batch, FM_num * 3), dtype=jnp.float32)

    params = init_net1_params(key, FM_num, PC_num)
    # bf16_epilogue=True targets v6e/v7x (native bf16 VPU); use False + 
    # max_batch_tile=128 on v5e.
    prepared = prepare_params(params, bf16_epilogue=True)

    out = net1_forward(x, prepared)
    out = jax.block_until_ready(out)

    ref = net1_reference(x, params, bf16_epilogue=True)
    assert out.shape == (batch, PC_num), out.shape
    max_err = float(jnp.max(jnp.abs(out - ref)))
    assert jnp.allclose(out, ref, atol=1e-2, rtol=1e-2), max_err

    print("KERNEL_OK")
</pallas_src>

<mosaic_0001>
module attributes {stable_mosaic.version = 11 : i64} {
  func.func @kernel(%arg0: i32, %arg1: memref<16x15xbf16, #tpu.memory_space<vmem>>, %arg2: memref<15x1024xbf16, #tpu.memory_space<vmem>>, %arg3: memref<1x1024xbf16, #tpu.memory_space<vmem>>, %arg4: memref<1024x512xbf16, #tpu.memory_space<vmem>>, %arg5: memref<1x512xbf16, #tpu.memory_space<vmem>>, %arg6: memref<512x256xbf16, #tpu.memory_space<vmem>>, %arg7: memref<1x256xbf16, #tpu.memory_space<vmem>>, %arg8: memref<256x128xbf16, #tpu.memory_space<vmem>>, %arg9: memref<1x128xf32, #tpu.memory_space<vmem>>, %arg10: memref<16x128xbf16, #tpu.memory_space<vmem>>) attributes {dimension_semantics = [#tpu.dimension_semantics<parallel>], iteration_bounds = array<i64: 1>, scalar_prefetch = 0 : i64, scratch_operands = 0 : i64, tpu.core_type = #tpu.core_type<tc>, window_params = [{transform_indices = @transform_0, window_bounds = array<i64: 16, 15>}, {pipeline_mode = #tpu.pipeline_mode<synchronous>, transform_indices = @transform_1, window_bounds = array<i64: 15, 1024>}, {pipeline_mode = #tpu.pipeline_mode<synchronous>, transform_indices = @transform_2, window_bounds = array<i64: 1, 1024>}, {pipeline_mode = #tpu.pipeline_mode<synchronous>, transform_indices = @transform_3, window_bounds = array<i64: 1024, 512>}, {pipeline_mode = #tpu.pipeline_mode<synchronous>, transform_indices = @transform_4, window_bounds = array<i64: 1, 512>}, {pipeline_mode = #tpu.pipeline_mode<synchronous>, transform_indices = @transform_5, window_bounds = array<i64: 512, 256>}, {pipeline_mode = #tpu.pipeline_mode<synchronous>, transform_indices = @transform_6, window_bounds = array<i64: 1, 256>}, {pipeline_mode = #tpu.pipeline_mode<synchronous>, transform_indices = @transform_7, window_bounds = array<i64: 256, 128>}, {pipeline_mode = #tpu.pipeline_mode<synchronous>, transform_indices = @transform_8, window_bounds = array<i64: 1, 128>}, {transform_indices = @transform_9, window_bounds = array<i64: 16, 128>}]} {
    %c0 = arith.constant 0 : index
    %c0_0 = arith.constant 0 : index
    %0 = vector.load %arg1[%c0, %c0_0] : memref<16x15xbf16, #tpu.memory_space<vmem>>, vector<16x15xbf16>
    %c0_1 = arith.constant 0 : index
    %c0_2 = arith.constant 0 : index
    %1 = vector.load %arg2[%c0_1, %c0_2] : memref<15x1024xbf16, #tpu.memory_space<vmem>>, vector<15x1024xbf16>
    %cst = arith.constant dense<0.000000e+00> : vector<16x1024xf32>
    %2 = tpu.matmul %0, %1, %cst {dimension_numbers = #tpu.dot_dimension_numbers<[1], [0], [0], [1], [0, 0, 1, 1], [], []>} : vector<16x15xbf16>, vector<15x1024xbf16>, vector<16x1024xf32> -> vector<16x1024xf32>
    %3 = arith.truncf %2 : vector<16x1024xf32> to vector<16x1024xbf16>
    %c0_3 = arith.constant 0 : index
    %c0_4 = arith.constant 0 : index
    %4 = vector.load %arg3[%c0_3, %c0_4] : memref<1x1024xbf16, #tpu.memory_space<vmem>>, vector<1x1024xbf16>
    %5 = vector.broadcast %4 : vector<1x1024xbf16> to vector<16x1024xbf16>
    %6 = arith.addf %3, %5 : vector<16x1024xbf16>
    %cst_5 = arith.constant 1.000980e-02 : bf16
    %7 = vector.broadcast %cst_5 : bf16 to vector<16x1024xbf16>
    %8 = arith.mulf %7, %6 : vector<16x1024xbf16>
    %9 = arith.maximumf %6, %8 : vector<16x1024xbf16>
    %c0_6 = arith.constant 0 : index
    %c0_7 = arith.constant 0 : index
    %10 = vector.load %arg4[%c0_6, %c0_7] : memref<1024x512xbf16, #tpu.memory_space<vmem>>, vector<1024x512xbf16>
    %cst_8 = arith.constant dense<0.000000e+00> : vector<16x512xf32>
    %11 = tpu.matmul %9, %10, %cst_8 {dimension_numbers = #tpu.dot_dimension_numbers<[1], [0], [0], [1], [0, 0, 1, 1], [], []>} : vector<16x1024xbf16>, vector<1024x512xbf16>, vector<16x512xf32> -> vector<16x512xf32>
    %12 = arith.truncf %11 : vector<16x512xf32> to vector<16x512xbf16>
    %c0_9 = arith.constant 0 : index
    %c0_10 = arith.constant 0 : index
    %13 = vector.load %arg5[%c0_9, %c0_10] : memref<1x512xbf16, #tpu.memory_space<vmem>>, vector<1x512xbf16>
    %14 = vector.broadcast %13 : vector<1x512xbf16> to vector<16x512xbf16>
    %15 = arith.addf %12, %14 : vector<16x512xbf16>
    %cst_11 = arith.constant 1.000980e-02 : bf16
    %16 = vector.broadcast %cst_11 : bf16 to vector<16x512xbf16>
    %17 = arith.mulf %16, %15 : vector<16x512xbf16>
    %18 = arith.maximumf %15, %17 : vector<16x512xbf16>
    %c0_12 = arith.constant 0 : index
    %c0_13 = arith.constant 0 : index
    %19 = vector.load %arg6[%c0_12, %c0_13] : memref<512x256xbf16, #tpu.memory_space<vmem>>, vector<512x256xbf16>
    %cst_14 = arith.constant dense<0.000000e+00> : vector<16x256xf32>
    %20 = tpu.matmul %18, %19, %cst_14 {dimension_numbers = #tpu.dot_dimension_numbers<[1], [0], [0], [1], [0, 0, 1, 1], [], []>} : vector<16x512xbf16>, vector<512x256xbf16>, vector<16x256xf32> -> vector<16x256xf32>
    %21 = arith.truncf %20 : vector<16x256xf32> to vector<16x256xbf16>
    %c0_15 = arith.constant 0 : index
    %c0_16 = arith.constant 0 : index
    %22 = vector.load %arg7[%c0_15, %c0_16] : memref<1x256xbf16, #tpu.memory_space<vmem>>, vector<1x256xbf16>
    %23 = vector.broadcast %22 : vector<1x256xbf16> to vector<16x256xbf16>
    %24 = arith.addf %21, %23 : vector<16x256xbf16>
    %cst_17 = arith.constant 1.000980e-02 : bf16
    %25 = vector.broadcast %cst_17 : bf16 to vector<16x256xbf16>
    %26 = arith.mulf %25, %24 : vector<16x256xbf16>
    %27 = arith.maximumf %24, %26 : vector<16x256xbf16>
    %c0_18 = arith.constant 0 : index
    %c0_19 = arith.constant 0 : index
    %28 = vector.load %arg8[%c0_18, %c0_19] : memref<256x128xbf16, #tpu.memory_space<vmem>>, vector<256x128xbf16>
    %cst_20 = arith.constant dense<0.000000e+00> : vector<16x128xf32>
    %29 = tpu.matmul %27, %28, %cst_20 {dimension_numbers = #tpu.dot_dimension_numbers<[1], [0], [0], [1], [0, 0, 1, 1], [], []>} : vector<16x256xbf16>, vector<256x128xbf16>, vector<16x128xf32> -> vector<16x128xf32>
    %c0_21 = arith.constant 0 : index
    %c0_22 = arith.constant 0 : index
    %30 = vector.load %arg9[%c0_21, %c0_22] : memref<1x128xf32, #tpu.memory_space<vmem>>, vector<1x128xf32>
    %31 = vector.broadcast %30 : vector<1x128xf32> to vector<16x128xf32>
    %32 = arith.addf %29, %31 : vector<16x128xf32>
    %33 = arith.truncf %32 : vector<16x128xf32> to vector<16x128xbf16>
    %c0_23 = arith.constant 0 : index
    %c0_24 = arith.constant 0 : index
    %34 = vector.load %arg10[%c0_23, %c0_24] : memref<16x128xbf16, #tpu.memory_space<vmem>>, vector<16x128xbf16>
    tpu.vector_store %arg10[%c0_23, %c0_24], %33 {strides = array<i32>} : memref<16x128xbf16, #tpu.memory_space<vmem>>, vector<16x128xbf16>,
    return
  }
  func.func @transform_0(%arg0: i32) -> (i32, i32) {
    %c0_i32 = arith.constant 0 : i32
    %c0_i32_0 = arith.constant 0 : i32
    return %arg0, %c0_i32 : i32, i32
  }
  func.func @transform_1(%arg0: i32) -> (i32, i32) {
    %c0_i32 = arith.constant 0 : i32
    %c0_i32_0 = arith.constant 0 : i32
    %c0_i32_1 = arith.constant 0 : i32
    return %c0_i32, %c0_i32_0 : i32, i32
  }
  func.func @transform_2(%arg0: i32) -> (i32, i32) {
    %c0_i32 = arith.constant 0 : i32
    %c0_i32_0 = arith.constant 0 : i32
    %c0_i32_1 = arith.constant 0 : i32
    return %c0_i32, %c0_i32_0 : i32, i32
  }
  func.func @transform_3(%arg0: i32) -> (i32, i32) {
    %c0_i32 = arith.constant 0 : i32
    %c0_i32_0 = arith.constant 0 : i32
    %c0_i32_1 = arith.constant 0 : i32
    return %c0_i32, %c0_i32_0 : i32, i32
  }
  func.func @transform_4(%arg0: i32) -> (i32, i32) {
    %c0_i32 = arith.constant 0 : i32
    %c0_i32_0 = arith.constant 0 : i32
    %c0_i32_1 = arith.constant 0 : i32
    return %c0_i32, %c0_i32_0 : i32, i32
  }
  func.func @transform_5(%arg0: i32) -> (i32, i32) {
    %c0_i32 = arith.constant 0 : i32
    %c0_i32_0 = arith.constant 0 : i32
    %c0_i32_1 = arith.constant 0 : i32
    return %c0_i32, %c0_i32_0 : i32, i32
  }
  func.func @transform_6(%arg0: i32) -> (i32, i32) {
    %c0_i32 = arith.constant 0 : i32
    %c0_i32_0 = arith.constant 0 : i32
    %c0_i32_1 = arith.constant 0 : i32
    return %c0_i32, %c0_i32_0 : i32, i32
  }
  func.func @transform_7(%arg0: i32) -> (i32, i32) {
    %c0_i32 = arith.constant 0 : i32
    %c0_i32_0 = arith.constant 0 : i32
    %c0_i32_1 = arith.constant 0 : i32
    return %c0_i32, %c0_i32_0 : i32, i32
  }
  func.func @transform_8(%arg0: i32) -> (i32, i32) {
    %c0_i32 = arith.constant 0 : i32
    %c0_i32_0 = arith.constant 0 : i32
    %c0_i32_1 = arith.constant 0 : i32
    return %c0_i32, %c0_i32_0 : i32, i32
  }
  func.func @transform_9(%arg0: i32) -> (i32, i32) {
    %c0_i32 = arith.constant 0 : i32
    %c0_i32_0 = arith.constant 0 : i32
    return %arg0, %c0_i32 : i32, i32
  }
}

</mosaic_0001>

<bundles_post_ra>
// kernel: tpu_custom_call.1
= control target key start
LH: loop header
LB: loop body
LE: loop exit
PB: predicated region body
PF: predicated region fallthrough
CT: control target
= control target key end

     0   :  { %14 = vsyncpa [#allocation3], 0  ;;  %s4576_s0 = inlined_call_operand.hbm [shape: bf16[16,15], index: 0, kind: input, shape index: {}]   ;;  %s4577_s1 = inlined_call_operand.hbm [shape: bf16[15,1024], index: 1, kind: input, shape index: {}]   ;;  %s4578_s2 = inlined_call_operand.hbm [shape: bf16[1,1024], index: 2, kind: input, shape index: {}]   ;;  %s4579_s3 = inlined_call_operand.hbm [shape: bf16[1024,512], index: 3, kind: input, shape index: {}]   ;;  %s4580_s4 = inlined_call_operand.vmem [shape: bf16[1,512], index: 4, kind: input, shape index: {}]   ;;  %s4581_s5 = inlined_call_operand.hbm [shape: bf16[512,256], index: 5, kind: input, shape index: {}]   ;;  %s4582_s6 = inlined_call_operand.vmem [shape: bf16[1,256], index: 6, kind: input, shape index: {}]   ;;  %s4583_s7 = inlined_call_operand.hbm [shape: bf16[256,128], index: 7, kind: input, shape index: {}]   ;;  %s4584_s8 = inlined_call_operand.vmem [shape: f32[1,128], index: 8, kind: input, shape index: {}]   ;;  %s4585_s9 = inlined_call_operand.hbm [shape: bf16[16,128], index: 9, kind: output, shape index: {}]  }
   0x1   :  { %15 = vsyncpa [#allocation6], 0 }
   0x2   :  { %16 = vsyncpa [#allocation9], 0 }
   0x3   :  { %17 = vsyncpa [#allocation12], 0 }
   0x4   :  { %18 = vsyncpa [#allocation4], 0  ;;  %s4268_s30 = smov [#allocation5]   ;;  %s4104_s13 = scalar_lea.hbm %s4577_s1, 1024 }
   0x5   :  { %s36_s10 = sshll.u32 %s4268_s30, 4  ;;  %p4105_p0 = scmp.ne.s32.totalorder %s4577_s1, %s4104_s13  ;;  %s37_s10 = int_to_ptr.vmem [resolvable:$true] %s36_s10 }
   0x6   :  { %p4108_p1 = scmp.lt.u32.totalorder %s4104_s13, %s4577_s1 }
   0x8   :  { %p4110_p2 = pnand %p4108_p1, %p4105_p0 }
   0xa   :  { %4113 = shalt.err (!%p4110_p2)
}
   0xb   :  { %s4114_s18 = scalar_lea.vmem %s37_s10, 1024  ;;  %p4119_p4 = scmp.lt.s32.totalorder %s37_s10, %s37_s10 }
   0xc   :  { %p4115_p3 = scmp.ne.s32.totalorder %s37_s10, %s4114_s18  ;;  %p4120_p5 = scmp.lt.s32.totalorder %s4114_s18, %s4114_s18 }
   0xe   :  { %p4121_p6 = por %p4120_p5, %p4119_p4 }
  0x10   :  { %p4122_p7 = pnand %p4121_p6, %p4115_p3 }
  0x12   :  { %4125 = shalt.err (!%p4122_p7)
}
  0x13   :  { %s4269_s19 = smov 512   ;;  %s4270_s20 = smov 32  }
  0x14   :  { %42 = dma.hbm_to_vmem [thread:$0]  %s4577_s1, 1024, %s37_s10, [#allocation6], %s4269_s19, %s4269_s19, %s4270_s20  }
  0x15   :  { %s4271_s23 = smov [#allocation8]   ;;  %s4126_s27 = scalar_lea.hbm %s4579_s3, 32768 }
  0x16   :  { %s58_s24 = sshll.u32 %s4271_s23, 4  ;;  %p4127_p8 = scmp.ne.s32.totalorder %s4579_s3, %s4126_s27  ;;  %s59_s24 = int_to_ptr.vmem [resolvable:$true] %s58_s24 }
  0x17   :  { %p4130_p9 = scmp.lt.u32.totalorder %s4126_s27, %s4579_s3 }
  0x19   :  { %p4132_p10 = pnand %p4130_p9, %p4127_p8 }
  0x1b   :  { %4135 = shalt.err (!%p4132_p10)
}
  0x1c   :  { %s4136_s12 = scalar_lea.vmem %s59_s24, 32768  ;;  %p4141_p12 = scmp.lt.s32.totalorder %s59_s24, %s59_s24 }
  0x1d   :  { %p4137_p11 = scmp.ne.s32.totalorder %s59_s24, %s4136_s12  ;;  %p4142_p13 = scmp.lt.s32.totalorder %s4136_s12, %s4136_s12 }
  0x1f   :  { %p4143_p0 = por %p4142_p13, %p4141_p12 }
  0x21   :  { %p4144_p1 = pnand %p4143_p0, %p4137_p11 }
  0x23   :  { %4147 = shalt.err (!%p4144_p1)
}
  0x24   :  { %s4272_s1 = smov 256   ;;  %s4273_s10 = smov 16  }
  0x25   :  { %64 = dma.hbm_to_vmem [thread:$0]  %s4579_s3, 32768, %s59_s24, [#allocation9], %s4272_s1, %s4272_s1, %s4273_s10  }
  0x26   :  { %s4274_s15 = smov [#allocation2]   ;;  %s4148_s19 = scalar_lea.hbm %s4576_s0, 128 }
  0x27   :  { %s24_s16 = sshll.u32 %s4274_s15, 4  ;;  %p4149_p2 = scmp.ne.s32.totalorder %s4576_s0, %s4148_s19  ;;  %s25_s16 = int_to_ptr.vmem [resolvable:$true] %s24_s16 }
  0x28   :  { %p4152_p3 = scmp.lt.u32.totalorder %s4148_s19, %s4576_s0 }
  0x2a   :  { %p4154_p4 = pnand %p4152_p3, %p4149_p2 }
  0x2c   :  { %4157 = shalt.err (!%p4154_p4)
}
  0x2d   :  { %s4158_s25 = scalar_lea.vmem %s25_s16, 128  ;;  %p4163_p6 = scmp.lt.s32.totalorder %s25_s16, %s25_s16 }
  0x2e   :  { %p4159_p5 = scmp.ne.s32.totalorder %s25_s16, %s4158_s25  ;;  %p4164_p7 = scmp.lt.s32.totalorder %s4158_s25, %s4158_s25 }
  0x30   :  { %p4165_p8 = por %p4164_p7, %p4163_p6 }
  0x32   :  { %p4166_p9 = pnand %p4165_p8, %p4159_p5 }
  0x34   :  { %4169 = shalt.err (!%p4166_p9)
}
  0x35   :  { %s4275_s3 = smov 64   ;;  %s4276_s24 = smov 4  }
  0x36   :  { %30 = dma.hbm_to_vmem [thread:$0]  %s4576_s0, 128, %s25_s16, [#allocation3], %s4275_s3, %s4275_s3, %s4276_s24  }
  0x37   :  { %s4277_s28 = smov [#allocation7]   ;;  %s4278_s30 = smov [#allocation10]  }
  0x38   :  { %s49_s29 = sshll.u32 %s4277_s28, 4  ;;  %s72_s11 = sshll.u32 %s4278_s30, 4  ;;  %s50_s29 = int_to_ptr.vmem [resolvable:$true] %s49_s29  ;;  %s73_s11 = int_to_ptr.vmem [resolvable:$true] %s72_s11 }
  0x39   :  { %s4170_s10 = scalar_lea.hbm %s4578_s2, 128 }
  0x3a   :  { %p4171_p10 = scmp.ne.s32.totalorder %s4578_s2, %s4170_s10  ;;  %p4174_p11 = scmp.lt.u32.totalorder %s4170_s10, %s4578_s2 }
  0x3c   :  { %p4176_p12 = pnand %p4174_p11, %p4171_p10 }
  0x3e   :  { %4179 = shalt.err (!%p4176_p12)
}
  0x3f   :  { %s4180_s0 = scalar_lea.vmem %s50_s29, 128  ;;  %p4185_p0 = scmp.lt.s32.totalorder %s50_s29, %s50_s29 }
  0x40   :  { %p4181_p13 = scmp.ne.s32.totalorder %s50_s29, %s4180_s0  ;;  %p4186_p1 = scmp.lt.s32.totalorder %s4180_s0, %s4180_s0 }
  0x42   :  { %p4187_p2 = por %p4186_p1, %p4185_p0 }
  0x44   :  { %p4188_p3 = pnand %p4187_p2, %p4181_p13 }
  0x46   :  { %4191 = shalt.err (!%p4188_p3)
}
  0x47   :  { %52 = dma.hbm_to_vmem [thread:$0]  %s4578_s2, 128, %s50_s29, [#allocation6]  }
  0x48   :  { %s4192_s21 = scalar_lea.hbm %s4581_s5, 8192 }
  0x49   :  { %p4193_p4 = scmp.ne.s32.totalorder %s4581_s5, %s4192_s21  ;;  %p4196_p5 = scmp.lt.u32.totalorder %s4192_s21, %s4581_s5 }
  0x4b   :  { %p4198_p6 = pnand %p4196_p5, %p4193_p4 }
  0x4d   :  { %4201 = shalt.err (!%p4198_p6)
}
  0x4e   :  { %s4202_s27 = scalar_lea.vmem %s73_s11, 8192  ;;  %p4207_p8 = scmp.lt.s32.totalorder %s73_s11, %s73_s11 }
  0x4f   :  { %p4203_p7 = scmp.ne.s32.totalorder %s73_s11, %s4202_s27  ;;  %p4208_p9 = scmp.lt.s32.totalorder %s4202_s27, %s4202_s27 }
  0x51   :  { %p4209_p10 = por %p4208_p9, %p4207_p8 }
  0x53   :  { %p4210_p11 = pnand %p4209_p10, %p4203_p7 }
  0x55   :  { %4213 = shalt.err (!%p4210_p11)
}
  0x56   :  { %s4279_s2 = smov 128   ;;  %s4280_s28 = smov 8  }
  0x57   :  { %78 = dma.hbm_to_vmem [thread:$0]  %s4581_s5, 8192, %s73_s11, [#allocation9], %s4279_s2, %s4279_s2, %s4280_s28  }
  0x58   :  { %s4281_s12 = smov [#allocation11]   ;;  %s4214_s14 = scalar_lea.hbm %s4583_s7, 2048 }
  0x59   :  { %s86_s1 = sshll.u32 %s4281_s12, 4  ;;  %p4215_p12 = scmp.ne.s32.totalorder %s4583_s7, %s4214_s14  ;;  %s87_s1 = int_to_ptr.vmem [resolvable:$true] %s86_s1 }
  0x5a   :  { %p4218_p13 = scmp.lt.u32.totalorder %s4214_s14, %s4583_s7 }
  0x5c   :  { %p4220_p0 = pnand %p4218_p13, %p4215_p12 }
  0x5e   :  { %4223 = shalt.err (!%p4220_p0)
}
  0x5f   :  { %s4224_s18 = scalar_lea.vmem %s87_s1, 2048  ;;  %p4229_p2 = scmp.lt.s32.totalorder %s87_s1, %s87_s1 }
  0x60   :  { %p4225_p1 = scmp.ne.s32.totalorder %s87_s1, %s4224_s18  ;;  %p4230_p3 = scmp.lt.s32.totalorder %s4224_s18, %s4224_s18 }
  0x62   :  { %p4231_p4 = por %p4230_p3, %p4229_p2 }
  0x64   :  { %p4232_p5 = pnand %p4231_p4, %p4225_p1 }
  0x66   :  { %4235 = shalt.err (!%p4232_p5)
}
  0x67   :  { %92 = dma.hbm_to_vmem [thread:$0]  %s4583_s7, 2048, %s87_s1, [#allocation12], %s4275_s3, %s4275_s3, %s4276_s24  }
  0x68   :  { %4258 = dma.done.wait [#allocation3], 128  }
  0x69   :  { %4259 = vsyncadd [#allocation3], 4294967168 }
  0x6a   :  { %4260 = dma.done.wait [#allocation6], 1152  }
  0x6b   :  { %4261 = vsyncadd [#allocation6], 4294966144 }
  0x6c   :  { %4262 = dma.done.wait [#allocation9], 40960  }
  0x6d   :  { %4263 = vsyncadd [#allocation9], 4294926336 }
  0x6e   :  { %4264 = dma.done.wait [#allocation12], 2048  }
  0x6f   :  { %4265 = vsyncadd [#allocation12], 4294965248  ;;  %vm166_vm0 = vcmask 1046528   ;;  %v4282_v0 = vmov 0   ;;  %vm167_vm1 = vcmask 1047552   ;;  %v4283_v1 = vmov 65535  }
  0x70   :  { %226 = vmatprep.mubr.bf16.mxu0 %v4282_v0  ;;  %v168_v2 = vsel %vm166_vm0, 4294967295, %v4283_v1  ;;  %v117_v3 = vld [vmem:[#allocation5] sm:$0xff]  ;;  %v118_v8 = vld [vmem:[#allocation5 + $0x8] sm:$0xff]  ;;  %v119_v10 = vld [vmem:[#allocation5 + $0x10] sm:$0xff]  ;;  %vm162_vm2 = vcmask 121856   ;;  %s4285_s22 = smov [#allocation13]  }
  0x71   :  { %v121_v4 = vld [vmem:[#allocation5 + $0x20] sm:$0xff]  ;;  %v169_v5 = vsel %vm167_vm1, %v168_v2, 0  ;;  %v122_v9 = vld [vmem:[#allocation5 + $0x28] sm:$0xff]  ;;  %v123_v11 = vld [vmem:[#allocation5 + $0x30] sm:$0xff]  ;;  %s3162_s23 = sshll.u32 %s4285_s22, 4  ;;  %s3163_s23 = int_to_ptr.vmem [resolvable:$true] %s3162_s23 }
  0x72   :  { %v3179_v6 = vcombine.high %v117_v3, %v121_v4  ;;  %v3178_v7 = vcombine.low %v117_v3, %v121_v4  ;;  %v4415_v14 = vld [vmem:[#allocation2] sm:$0xff]   ;;  %v3180_v15 = vcombine.low %v118_v8, %v122_v9  ;;  %v3181_v16 = vcombine.high %v118_v8, %v122_v9  ;;  %s4236_s25 = scalar_lea.vmem %s3163_s23, 128  ;;  %p4241_p7 = scmp.lt.s32.totalorder %s3163_s23, %s3163_s23 }
  0x73   :  { %v3183_v17 = vcombine.high %v119_v10, %v123_v11  ;;  %v3607_v18 = vld [vmem:[#allocation8 + $0x4] ss:$16 sps:$4 sm:$0xff]   ;;  %v3609_v19 = vld [vmem:[#allocation8] ss:$16 sps:$4 sm:$0xff]   ;;  %v3182_v28 = vcombine.low %v119_v10, %v123_v11  ;;  %p4237_p6 = scmp.ne.s32.totalorder %s3163_s23, %s4236_s25  ;;  %p4242_p8 = scmp.lt.s32.totalorder %s4236_s25, %s4236_s25 }
  0x74   :  { %v174_v12 = vand.u32 %v3179_v6, %v169_v5  ;;  %v171_v13 = vand.u32 %v3178_v7, %v169_v5  ;;  %v180_v20 = vand.u32 %v3181_v16, %v169_v5  ;;  %v3610_v21 = vld [vmem:[#allocation8 + $0x24] ss:$16 sps:$4 sm:$0xff]   ;;  %v177_v22 = vand.u32 %v3180_v15, %v169_v5  ;;  %2041 = vmatprep.subr.bf16.mxu1 %v3607_v18  ;;  %v3612_v26 = vld [vmem:[#allocation8 + $0x20] ss:$16 sps:$4 sm:$0xff]  }
  0x75   :  { %v186_v23 = vand.u32 %v3183_v17, %v169_v5  ;;  %v120_v24 = vld [vmem:[#allocation5 + $0x18] sm:$0xff]  ;;  %2042 = vmatpush1.bf16.msra.mxu1 %v3609_v19  ;;  %v183_v32 = vand.u32 %v3182_v28, %v169_v5  ;;  %p4243_p9 = por %p4242_p8, %p4241_p7 }
  0x76   :  { %194 = vmatprep.subr.bf16.mxu0 %v174_v12  ;;  %v124_v25 = vld [vmem:[#allocation5 + $0x38] sm:$0xff]  ;;  %2043 = vmatprep.subr.bf16.mxu1 %v3610_v21 }
  0x77   :  { %195 = vmatpush1.bf16.msra.mxu0 %v171_v13  ;;  %v3613_v27 = vld [vmem:[#allocation8 + $0x44] ss:$16 sps:$4 sm:$0xff]   ;;  %v3185_v29 = vcombine.high %v120_v24, %v124_v25  ;;  %v3618_v30 = vld [vmem:[#allocation8 + $0x40] ss:$16 sps:$4 sm:$0xff]   ;;  %v3184_v36 = vcombine.low %v120_v24, %v124_v25  ;;  %p4244_p10 = pnand %p4243_p9, %p4237_p6 }
  0x78   :  { %237 = vmatprep.subr.bf16.mxu0 %v180_v20  ;;  %v3619_v31 = vld [vmem:[#allocation8 + $0x64] ss:$16 sps:$4 sm:$0xff]   ;;  %v3624_v34 = vld [vmem:[#allocation8 + $0x60] ss:$16 sps:$4 sm:$0xff]  }
  0x79   :  { %2044 = vmatpush1.bf16.msra.mxu1 %v3612_v26  ;;  %v192_v33 = vand.u32 %v3185_v29, %v169_v5  ;;  %v3625_v35 = vld [vmem:[#allocation8 + $0x84] ss:$16 sps:$4 sm:$0xff]   ;;  %v3630_v37 = vld [vmem:[#allocation8 + $0x80] ss:$16 sps:$4 sm:$0xff]   ;;  %v189_v39 = vand.u32 %v3184_v36, %v169_v5  ;;  %v3702_v26 = vld [vmem:[#allocation8 + $0xc] ss:$16 sps:$4 sm:$0xff]  }
  0x7a   :  { %3186 = vmatmul.mubr.msk.bf16.vlgmr.msra.gmra.mrb[0].mxu0 %vm162_vm2, %v4415_v14  ;;  %2045 = vmatprep.subr.bf16.mxu1 %v3613_v27  ;;  %v3631_v38 = vld [vmem:[#allocation8 + $0xa4] ss:$16 sps:$4 sm:$0xff]   ;;  %v3636_v41 = vld [vmem:[#allocation8 + $0xa0] ss:$16 sps:$4 sm:$0xff]  }
  0x7b   :  { %238 = vmatpush1.bf16.msra.mxu0 %v177_v22  ;;  %269 = vmatprep.mubr.bf16.mxu0 %v4282_v0  ;;  %v3617_v40 = vld [vmem:[#allocation8 + $0x204] ss:$16 sps:$4 sm:$0xff]   ;;  %v3642_v43 = vld [vmem:[#allocation8 + $0xc0] ss:$16 sps:$4 sm:$0xff]  }
  0x7c   :  { %280 = vmatprep.subr.bf16.mxu0 %v186_v23  ;;  %v3637_v42 = vld [vmem:[#allocation8 + $0xc4] ss:$16 sps:$4 sm:$0xff]   ;;  %v3615_v45 = vld [vmem:[#allocation8 + $0x200] ss:$16 sps:$4 sm:$0xff]  }
  0x7d   :  { %2046 = vmatpush1.bf16.msra.mxu1 %v3618_v30  ;;  %v3643_v44 = vld [vmem:[#allocation8 + $0xe4] ss:$16 sps:$4 sm:$0xff]   ;;  %v3621_v47 = vld [vmem:[#allocation8 + $0x220] ss:$16 sps:$4 sm:$0xff]  }
  0x7e   :  { %2047 = vmatprep.subr.bf16.mxu1 %v3619_v31  ;;  %v3623_v46 = vld [vmem:[#allocation8 + $0x224] ss:$16 sps:$4 sm:$0xff]   ;;  %v3648_v48 = vld [vmem:[#allocation8 + $0xe0] ss:$16 sps:$4 sm:$0xff]   ;;  %v4284_v31 = vmov 1966171168  }
  0x7f   :  { %v3649_v49 = vld [vmem:[#allocation8 + $0x104] ss:$16 sps:$4 sm:$0xff]   ;;  %v3654_v51 = vld [vmem:[#allocation8 + $0x100] ss:$16 sps:$4 sm:$0xff]  }
  0x80   :  { %v3629_v50 = vld [vmem:[#allocation8 + $0x244] ss:$16 sps:$4 sm:$0xff]   ;;  %v3627_v53 = vld [vmem:[#allocation8 + $0x240] ss:$16 sps:$4 sm:$0xff]  }
  0x81   :  { %2048 = vmatpush1.bf16.msra.mxu1 %v3624_v34  ;;  %v3655_v52 = vld [vmem:[#allocation8 + $0x124] ss:$16 sps:$4 sm:$0xff]   ;;  %v3660_v55 = vld [vmem:[#allocation8 + $0x120] ss:$16 sps:$4 sm:$0xff]  }
  0x82   :  { %3187 = vmatmul.mubr.msk.bf16.vlgmr.msra.gmra.mrb[4].mxu0 %vm162_vm2, %v4415_v14  ;;  %2049 = vmatprep.subr.bf16.mxu1 %v3625_v35  ;;  %v3635_v54 = vld [vmem:[#allocation8 + $0x264] ss:$16 sps:$4 sm:$0xff]   ;;  %v3633_v57 = vld [vmem:[#allocation8 + $0x260] ss:$16 sps:$4 sm:$0xff]  }
  0x83   :  { %281 = vmatpush1.bf16.msra.mxu0 %v183_v32  ;;  %312 = vmatprep.mubr.bf16.mxu0 %v4282_v0  ;;  %v3661_v56 = vld [vmem:[#allocation8 + $0x144] ss:$16 sps:$4 sm:$0xff]   ;;  %v3666_v59 = vld [vmem:[#allocation8 + $0x140] ss:$16 sps:$4 sm:$0xff]   ;;  %v378_v32 = vunpack.c.l.s4 %v4284_v31 }
  0x84   :  { %323 = vmatprep.subr.bf16.mxu0 %v192_v33  ;;  %v3641_v58 = vld [vmem:[#allocation8 + $0x284] ss:$16 sps:$4 sm:$0xff]   ;;  %v3639_v61 = vld [vmem:[#allocation8 + $0x280] ss:$16 sps:$4 sm:$0xff]   ;;  %v380_v33 = vlaneseq }
  0x85   :  { %2050 = vmatpush1.bf16.msra.mxu1 %v3630_v37  ;;  %v3667_v60 = vld [vmem:[#allocation8 + $0x164] ss:$16 sps:$4 sm:$0xff]   ;;  %v3672_v63 = vld [vmem:[#allocation8 + $0x160] ss:$16 sps:$4 sm:$0xff]   ;;  %v379_v34 = vunpack.c.0.s8 %v378_v32  ;;  %v374_v37 = vld [vmem:[#allocation7] sm:$0xff] }
  0x86   :  { %2051 = vmatprep.subr.bf16.mxu1 %v3631_v38  ;;  %v3647_v62 = vld [vmem:[#allocation8 + $0x2a4] ss:$16 sps:$4 sm:$0xff]   ;;  %v3645_v1 = vld [vmem:[#allocation8 + $0x2a0] ss:$16 sps:$4 sm:$0xff]   ;;  %v381_v35 = vshrl.u32 %v380_v33, 7 }
  0x87   :  { %v3653_v2 = vld [vmem:[#allocation8 + $0x2c4] ss:$16 sps:$4 sm:$0xff]   ;;  %v3678_v3 = vld [vmem:[#allocation8 + $0x180] ss:$16 sps:$4 sm:$0xff]  }
  0x88   :  { %v3651_v4 = vld [vmem:[#allocation8 + $0x2c0] ss:$16 sps:$4 sm:$0xff]   ;;  %v3659_v5 = vld [vmem:[#allocation8 + $0x2e4] ss:$16 sps:$4 sm:$0xff]   ;;  %v4428_v36 = vsub.s32 %v379_v34, %v381_v35  ;;  %v3718_v34 = vld [vmem:[#allocation8 + $0x68] ss:$16 sps:$4 sm:$0xff]  }
  0x89   :  { %2052 = vmatpush1.bf16.msra.mxu1 %v3636_v41  ;;  %v3657_v6 = vld [vmem:[#allocation8 + $0x2e0] ss:$16 sps:$4 sm:$0xff]   ;;  %v3665_v7 = vld [vmem:[#allocation8 + $0x304] ss:$16 sps:$4 sm:$0xff]  }
  0x8a   :  { %3188 = vmatmul.mubr.msk.bf16.vlgmr.msra.gmra.mrb[8].mxu0 %vm162_vm2, %v4415_v14  ;;  %2053 = vmatprep.subr.bf16.mxu1 %v3637_v42  ;;  %v3663_v8 = vld [vmem:[#allocation8 + $0x300] ss:$16 sps:$4 sm:$0xff]   ;;  %v3671_v9 = vld [vmem:[#allocation8 + $0x324] ss:$16 sps:$4 sm:$0xff]   ;;  %v383_v38 = vrot.slane %v374_v37, %v4428_v36 }
  0x8b   :  { %324 = vmatpush1.bf16.msra.mxu0 %v189_v39  ;;  %355 = vmatprep.mubr.bf16.mxu0 %v4282_v0  ;;  %v3673_v0 = vld [vmem:[#allocation8 + $0x184] ss:$16 sps:$4 sm:$0xff]   ;;  %v3669_v10 = vld [vmem:[#allocation8 + $0x320] ss:$16 sps:$4 sm:$0xff]  }
  0x8c   :  { %2084 = vmatprep.subr.bf16.mxu0 %v3617_v40  ;;  %v3677_v11 = vld [vmem:[#allocation8 + $0x344] ss:$16 sps:$4 sm:$0xff]   ;;  %v3675_v12 = vld [vmem:[#allocation8 + $0x340] ss:$16 sps:$4 sm:$0xff]   ;;  %v391_v39 = vcombine.high %v383_v38, %v383_v38  ;;  %v399_v40 = vrot.slane %v383_v38, %v4428_v36  ;;  %v3726_v38 = vld [vmem:[#allocation8 + $0x8c] ss:$16 sps:$4 sm:$0xff]  }
  0x8d   :  { %2054 = vmatpush1.bf16.msra.mxu1 %v3642_v43  ;;  %v3679_v13 = vld [vmem:[#allocation8 + $0x1a4] ss:$16 sps:$4 sm:$0xff]   ;;  %v3681_v15 = vld [vmem:[#allocation8 + $0x360] ss:$16 sps:$4 sm:$0xff]   ;;  %v4433_v43 = vsub.s32 0, %v381_v35 }
  0x8e   :  { %2055 = vmatprep.subr.bf16.mxu1 %v3643_v44  ;;  %v3684_v16 = vld [vmem:[#allocation8 + $0x1a0] ss:$16 sps:$4 sm:$0xff]   ;;  %v3685_v17 = vld [vmem:[#allocation8 + $0x1c4] ss:$16 sps:$4 sm:$0xff]   ;;  %v413_v41 = vrot.slane %v391_v39, %v4428_v36  ;;  %v426_v42 = vpack.i.b16 %v399_v40, %v399_v40 }
  0x8f   :  { %v3689_v18 = vld [vmem:[#allocation8 + $0x384] ss:$16 sps:$4 sm:$0xff]   ;;  %v3687_v19 = vld [vmem:[#allocation8 + $0x380] ss:$16 sps:$4 sm:$0xff]  }
  0x90   :  { %v3690_v20 = vld [vmem:[#allocation8 + $0x1c0] ss:$16 sps:$4 sm:$0xff]   ;;  %v3691_v21 = vld [vmem:[#allocation8 + $0x1e4] ss:$16 sps:$4 sm:$0xff]   ;;  %v433_v44 = vpack.i.b16 %v413_v41, %v413_v41 }
  0x91   :  { %2056 = vmatpush1.bf16.msra.mxu1 %v3648_v48  ;;  %v3695_v22 = vld [vmem:[#allocation8 + $0x3a4] ss:$16 sps:$4 sm:$0xff]   ;;  %v3693_v23 = vld [vmem:[#allocation8 + $0x3a0] ss:$16 sps:$4 sm:$0xff]   ;;  %v431_v48 = vrot.slane %v426_v42, %v4433_v43 }
  0x92   :  { %3189 = vmatmul.mubr.msk.bf16.vlgmr.msra.gmra.mrb[12].mxu0 %vm162_vm2, %v4415_v14  ;;  %2057 = vmatprep.subr.bf16.mxu1 %v3649_v49  ;;  %v3683_v14 = vld [vmem:[#allocation8 + $0x364] ss:$16 sps:$4 sm:$0xff]   ;;  %v3696_v24 = vld [vmem:[#allocation8 + $0x1e0] ss:$16 sps:$4 sm:$0xff]   ;;  %v421_v49 = vcombine.high %v399_v40, %v399_v40 }
  0x93   :  { %2085 = vmatpush1.bf16.msra.mxu0 %v3615_v45  ;;  %v3699_v25 = vld [vmem:[#allocation8 + $0x3c4] ss:$16 sps:$4 sm:$0xff]   ;;  %v3697_v27 = vld [vmem:[#allocation8 + $0x3c0] ss:$16 sps:$4 sm:$0xff]   ;;  %v376_v45 = vcombine.high %v374_v37, %v374_v37 }
  0x94   :  { %2086 = vmatprep.subr.bf16.mxu0 %v3623_v46  ;;  %v3705_v28 = vld [vmem:[#allocation8 + $0x3e4] ss:$16 sps:$4 sm:$0xff]   ;;  %v3703_v29 = vld [vmem:[#allocation8 + $0x3e0] ss:$16 sps:$4 sm:$0xff]  }
  0x95   :  { %2058 = vmatpush1.bf16.msra.mxu1 %v3654_v51  ;;  %v3711_v30 = vld [vmem:[#allocation8 + $0x404] ss:$16 sps:$4 sm:$0xff]   ;;  %v438_v51 = vrot.slane %v433_v44, %v4433_v43  ;;  %v3715_v33 = vld [vmem:[#allocation8 + $0x420] ss:$16 sps:$4 sm:$0xff]   ;;  %v3724_v44 = vld [vmem:[#allocation8 + $0x88] ss:$16 sps:$4 sm:$0xff]  }
  0x96   :  { %2059 = vmatprep.subr.bf16.mxu1 %v3655_v52  ;;  %v423_v52 = vcombine.high %v413_v41, %v413_v41  ;;  %v3723_v37 = vld [vmem:[#allocation8 + $0x444] ss:$16 sps:$4 sm:$0xff]   ;;  %v3721_v42 = vld [vmem:[#allocation8 + $0x440] ss:$16 sps:$4 sm:$0xff]  }
  0x97   :  { %2087 = vmatpush1.bf16.msra.mxu0 %v3621_v47 }
  0x98   :  { %2088 = vmatprep.subr.bf16.mxu0 %v3629_v50 }
  0x99   :  { %2060 = vmatpush1.bf16.msra.mxu1 %v3660_v55 }
  0x9a   :  { %2061 = vmatprep.subr.bf16.mxu1 %v3661_v56 }
  0x9b   :  { %2089 = vmatpush1.bf16.msra.mxu0 %v3627_v53  ;;  %v4438_v53 = vrot.slane %v376_v45, %v4428_v36 }
  0x9c   :  { %2090 = vmatprep.subr.bf16.mxu0 %v3635_v54 }
  0x9d   :  { %2062 = vmatpush1.bf16.msra.mxu1 %v3666_v59 }
  0x9e   :  { %2063 = vmatprep.subr.bf16.mxu1 %v3667_v60  ;;  %v447_v60 = vpack.i.b16 %v423_v52, %v423_v52  ;;  %v3727_v52 = vld [vmem:[#allocation8 + $0x460] ss:$16 sps:$4 sm:$0xff]  }
  0x9f   :  { %2091 = vmatpush1.bf16.msra.mxu0 %v3633_v57 }
  0xa0   :  { %2092 = vmatprep.subr.bf16.mxu0 %v3641_v58  ;;  %v440_v58 = vpack.i.b16 %v421_v49, %v421_v49 }
  0xa1   :  { %2064 = vmatpush1.bf16.msra.mxu1 %v3672_v63 }
  0xa2   :  { %2065 = vmatprep.subr.bf16.mxu1 %v3673_v0 }
  0xa3   :  { %2093 = vmatpush1.bf16.msra.mxu0 %v3639_v61  ;;  %v392_v61 = vcombine.high %v4438_v53, %v4438_v53 }
  0xa4   :  { %2094 = vmatprep.subr.bf16.mxu0 %v3647_v62 }
  0xa5   :  { %2066 = vmatpush1.bf16.msra.mxu1 %v3678_v3 }
  0xa6   :  { %2067 = vmatprep.subr.bf16.mxu1 %v3679_v13 }
  0xa7   :  { %2095 = vmatpush1.bf16.msra.mxu0 %v3645_v1 }
  0xa8   :  { %2096 = vmatprep.subr.bf16.mxu0 %v3653_v2  ;;  %v445_v2 = vrot.slane %v440_v58, %v4433_v43  ;;  %v3736_v58 = vld [vmem:[#allocation8 + $0xc8] ss:$16 sps:$4 sm:$0xff]  }
  0xa9   :  { %2068 = vmatpush1.bf16.msra.mxu1 %v3684_v16 }
  0xaa   :  { %2069 = vmatprep.subr.bf16.mxu1 %v3685_v17 }
  0xab   :  { %2097 = vmatpush1.bf16.msra.mxu0 %v3651_v4  ;;  %v452_v4 = vrot.slane %v447_v60, %v4433_v43  ;;  %v3744_v60 = vld [vmem:[#allocation8 + $0xec] ss:$16 sps:$4 sm:$0xff]  }
  0xac   :  { %2098 = vmatprep.subr.bf16.mxu0 %v3659_v5 }
  0xad   :  { %2070 = vmatpush1.bf16.msra.mxu1 %v3690_v20 }
  0xae   :  { %2071 = vmatprep.subr.bf16.mxu1 %v3691_v21 }
  0xaf   :  { %2099 = vmatpush1.bf16.msra.mxu0 %v3657_v6  ;;  %v3700_v6 = vld [vmem:[#allocation8 + $0x8] ss:$16 sps:$4 sm:$0xff]  }
  0xb0   :  { %2100 = vmatprep.subr.bf16.mxu0 %v3665_v7  ;;  %v4445_v7 = vrot.slane %v392_v61, %v4428_v36  ;;  %v3739_v61 = vld [vmem:[#allocation8 + $0x4a0] ss:$16 sps:$4 sm:$0xff]  }
  0xb1   :  { %2072 = vmatpush1.bf16.msra.mxu1 %v3696_v24  ;;  %v3709_v24 = vld [vmem:[#allocation8 + $0x400] ss:$16 sps:$4 sm:$0xff]  }
  0xb2   :  { %2213 = vmatprep.subr.bf16.mxu1 %v3702_v26  ;;  %v461_v16 = vpack.i.b16 %v4445_v7, %v4445_v7 }
  0xb3   :  { %2101 = vmatpush1.bf16.msra.mxu0 %v3663_v8 }
  0xb4   :  { %2102 = vmatprep.subr.bf16.mxu0 %v3671_v9 }
  0xb7   :  { %2103 = vmatpush1.bf16.msra.mxu0 %v3669_v10 }
  0xb8   :  { %2104 = vmatprep.subr.bf16.mxu0 %v3677_v11  ;;  %v3708_v11 = vld [vmem:[#allocation8 + $0x2c] ss:$16 sps:$4 sm:$0xff]  }
  0xbb   :  { %2105 = vmatpush1.bf16.msra.mxu0 %v3675_v12 }
  0xbc   :  { %2106 = vmatprep.subr.bf16.mxu0 %v3683_v14 }
  0xbf   :  { %2107 = vmatpush1.bf16.msra.mxu0 %v3681_v15  ;;  %v3706_v15 = vld [vmem:[#allocation8 + $0x28] ss:$16 sps:$4 sm:$0xff]  }
  0xc0   :  { %2108 = vmatprep.subr.bf16.mxu0 %v3689_v18  ;;  %v3714_v18 = vld [vmem:[#allocation8 + $0x4c] ss:$16 sps:$4 sm:$0xff]  }
  0xc3   :  { %2109 = vmatpush1.bf16.msra.mxu0 %v3687_v19 }
  0xc4   :  { %2110 = vmatprep.subr.bf16.mxu0 %v3695_v22 }
  0xc7   :  { %2111 = vmatpush1.bf16.msra.mxu0 %v3693_v23 }
  0xc8   :  { %2112 = vmatprep.subr.bf16.mxu0 %v3699_v25  ;;  %v3712_v25 = vld [vmem:[#allocation8 + $0x48] ss:$16 sps:$4 sm:$0xff]  }
  0xcb   :  { %2113 = vmatpush1.bf16.msra.mxu0 %v3697_v27  ;;  %v466_v27 = vrot.slane %v461_v16, %v4433_v43  ;;  %v3766_v16 = vld [vmem:[#allocation8 + $0x168] ss:$16 sps:$4 sm:$0xff]  }
  0xcc   :  { %2114 = vmatprep.subr.bf16.mxu0 %v3705_v28  ;;  %v3717_v28 = vld [vmem:[#allocation8 + $0x424] ss:$16 sps:$4 sm:$0xff]  }
  0xcf   :  { %2115 = vmatpush1.bf16.msra.mxu0 %v3703_v29  ;;  %v3720_v29 = vld [vmem:[#allocation8 + $0x6c] ss:$16 sps:$4 sm:$0xff]  }
  0xd0   :  { %2127 = vmatprep.subr.bf16.mxu0 %v3711_v30 }
 0x14d   :  { %v228_v46 = vpop.f32.mrb[0].mxu0 }
 0x14e   :  { %v230_v47 = vpop.f32.mrb[1].mxu0 }
 0x14f   :  { %v232_v50 = vpop.f32.mrb[2].mxu0 }
 0x150   :  { %v366_v54 = vpack.c.bf16 %v232_v50, %v228_v46  ;;  %v234_v55 = vpop.f32.mrb[3].mxu0 }
 0x151   :  { %v367_v56 = vpack.c.bf16 %v234_v55, %v230_v47  ;;  %v3729_v47 = vld [vmem:[#allocation8 + $0x464] ss:$16 sps:$4 sm:$0xff]  }
 0x152   :  { %v481_v57 = vadd.bf16 %v431_v48, %v366_v54  ;;  %v3732_v48 = vld [vmem:[#allocation8 + $0xac] ss:$16 sps:$4 sm:$0xff]   ;;  %v3730_v54 = vld [vmem:[#allocation8 + $0xa8] ss:$16 sps:$4 sm:$0xff]   ;;  %v3735_v55 = vld [vmem:[#allocation8 + $0x484] ss:$16 sps:$4 sm:$0xff]  }
 0x153   :  { %v482_v59 = vadd.bf16 %v438_v51, %v367_v56  ;;  %v3738_v56 = vld [vmem:[#allocation8 + $0xcc] ss:$16 sps:$4 sm:$0xff]  }
 0x154   :  { %v489_v62 = vmul.bf16 1009007652, %v481_v57 }
 0x155   :  { %v271_v63 = vpop.f32.mrb[4].mxu0  ;;  %v490_v0 = vmul.bf16 1009007652, %v482_v59 }
 0x156   :  { %v273_v1 = vpop.f32.mrb[5].mxu0  ;;  %v4447_v10 = vmax.bf16 %v489_v62, %v481_v57  ;;  %v3733_v57 = vld [vmem:[#allocation8 + $0x480] ss:$16 sps:$4 sm:$0xff]   ;;  %v3742_v62 = vld [vmem:[#allocation8 + $0xe8] ss:$16 sps:$4 sm:$0xff]  }
 0x157   :  { %v275_v3 = vpop.f32.mrb[6].mxu0  ;;  %v498_v5 = vmax.bf16 %v490_v0, %v482_v59  ;;  %v3741_v59 = vld [vmem:[#allocation8 + $0x4a4] ss:$16 sps:$4 sm:$0xff]   ;;  %v3750_v0 = vld [vmem:[#allocation8 + $0x10c] ss:$16 sps:$4 sm:$0xff]  }
 0x158   :  { %v368_v8 = vpack.c.bf16 %v275_v3, %v271_v63  ;;  %v277_v9 = vpop.f32.mrb[7].mxu0  ;;  %v3747_v63 = vld [vmem:[#allocation8 + $0x4c4] ss:$16 sps:$4 sm:$0xff]  }
 0x159   :  { %v369_v12 = vpack.c.bf16 %v277_v9, %v273_v1  ;;  %2073 = vmatprep.mubr.bf16.mxu1 %v498_v5  ;;  %v3745_v1 = vld [vmem:[#allocation8 + $0x4c0] ss:$16 sps:$4 sm:$0xff]   ;;  %v3753_v3 = vld [vmem:[#allocation8 + $0x4e4] ss:$16 sps:$4 sm:$0xff]   ;;  %v3762_v9 = vld [vmem:[#allocation8 + $0x14c] ss:$16 sps:$4 sm:$0xff]  }
 0x15a   :  { %v483_v13 = vadd.bf16 %v445_v2, %v368_v8  ;;  %2074 = vmatmul.mubr.bf16.vlgmr.msra.gmra.mrb[0].mxu1 %v4447_v10  ;;  %v3748_v2 = vld [vmem:[#allocation8 + $0x108] ss:$16 sps:$4 sm:$0xff]   ;;  %v3759_v8 = vld [vmem:[#allocation8 + $0x504] ss:$16 sps:$4 sm:$0xff]  }
 0x15b   :  { %v484_v14 = vadd.bf16 %v452_v4, %v369_v12  ;;  %2214 = vmatpush1.bf16.msra.mxu1 %v3700_v6  ;;  %2245 = vmatprep.mubr.bf16.mxu1 %v498_v5  ;;  %v3756_v4 = vld [vmem:[#allocation8 + $0x12c] ss:$16 sps:$4 sm:$0xff]   ;;  %v3751_v5 = vld [vmem:[#allocation8 + $0x4e0] ss:$16 sps:$4 sm:$0xff]   ;;  %v3754_v6 = vld [vmem:[#allocation8 + $0x128] ss:$16 sps:$4 sm:$0xff]  }
 0x15c   :  { %v491_v17 = vmul.bf16 1009007652, %v483_v13  ;;  %2215 = vmatprep.subr.bf16.mxu1 %v3708_v11  ;;  %v3757_v11 = vld [vmem:[#allocation8 + $0x500] ss:$16 sps:$4 sm:$0xff]   ;;  %v3760_v12 = vld [vmem:[#allocation8 + $0x148] ss:$16 sps:$4 sm:$0xff]  }
 0x15d   :  { %v492_v19 = vmul.bf16 1009007652, %v484_v14  ;;  %v4452_v20 = vpop.f32.mrb[8].mxu0 }
 0x15e   :  { %v4454_v21 = vmax.bf16 %v491_v17, %v483_v13  ;;  %v316_v22 = vpop.f32.mrb[9].mxu0  ;;  %v3765_v13 = vld [vmem:[#allocation8 + $0x524] ss:$16 sps:$4 sm:$0xff]  }
 0x15f   :  { %2216 = vmatpush1.bf16.msra.mxu1 %v3706_v15  ;;  %v4456_v23 = vmax.bf16 %v492_v19, %v484_v14  ;;  %v4458_v26 = vpop.f32.mrb[10].mxu0  ;;  %v3768_v14 = vld [vmem:[#allocation8 + $0x16c] ss:$16 sps:$4 sm:$0xff]   ;;  %v3763_v15 = vld [vmem:[#allocation8 + $0x520] ss:$16 sps:$4 sm:$0xff]  }
 0x160   :  { %2217 = vmatprep.subr.bf16.mxu1 %v3714_v18  ;;  %v370_v30 = vpack.c.bf16 %v4458_v26, %v4452_v20  ;;  %v320_v31 = vpop.f32.mrb[11].mxu0  ;;  %v3771_v17 = vld [vmem:[#allocation8 + $0x544] ss:$16 sps:$4 sm:$0xff]   ;;  %v3774_v18 = vld [vmem:[#allocation8 + $0x18c] ss:$16 sps:$4 sm:$0xff]  }
 0x161   :  { %2116 = vmatprep.mubr.bf16.mxu0 %v4456_v23  ;;  %v371_v32 = vpack.c.bf16 %v320_v31, %v316_v22  ;;  %v3769_v19 = vld [vmem:[#allocation8 + $0x540] ss:$16 sps:$4 sm:$0xff]   ;;  %v3772_v22 = vld [vmem:[#allocation8 + $0x188] ss:$16 sps:$4 sm:$0xff]   ;;  %v3783_v31 = vld [vmem:[#allocation8 + $0x584] ss:$16 sps:$4 sm:$0xff]  }
 0x162   :  { %2117 = vmatmul.mubr.bf16.vlgmr.msra.gmra.mrb[16].mxu0 %v4454_v21  ;;  %v3803_v20 = vld [vmem:[#allocation8 + $0x228] ss:$16 sps:$4 sm:$0xff]   ;;  %v3808_v26 = vld [vmem:[#allocation8 + $0x604] ss:$16 sps:$4 sm:$0xff]  }
 0x163   :  { %2128 = vmatpush1.bf16.msra.mxu0 %v3709_v24  ;;  %2218 = vmatpush1.bf16.msra.mxu1 %v3712_v25  ;;  %v486_v35 = vadd.bf16 %v466_v27, %v371_v32  ;;  %v3777_v24 = vld [vmem:[#allocation8 + $0x564] ss:$16 sps:$4 sm:$0xff]   ;;  %v3780_v25 = vld [vmem:[#allocation8 + $0x1ac] ss:$16 sps:$4 sm:$0xff]   ;;  %v4482_v27 = vrot.slane %v4438_v53, %v4428_v36 }
 0x164   :  { %2129 = vmatprep.subr.bf16.mxu0 %v3717_v28  ;;  %2219 = vmatprep.subr.bf16.mxu1 %v3720_v29  ;;  %v3775_v28 = vld [vmem:[#allocation8 + $0x560] ss:$16 sps:$4 sm:$0xff]   ;;  %v3778_v29 = vld [vmem:[#allocation8 + $0x1a8] ss:$16 sps:$4 sm:$0xff]   ;;  %v3786_v32 = vld [vmem:[#allocation8 + $0x1cc] ss:$16 sps:$4 sm:$0xff]  }
 0x165   :  { %v494_v39 = vmul.bf16 1009007652, %v486_v35  ;;  %v4465_v40 = vpop.f32.mrb[12].mxu0  ;;  %v3789_v53 = vld [vmem:[#allocation8 + $0x5a4] ss:$16 sps:$4 sm:$0xff]  }
 0x166   :  { %v4467_v41 = vpop.f32.mrb[13].mxu0 }
 0x167   :  { %2130 = vmatpush1.bf16.msra.mxu0 %v3715_v33  ;;  %2220 = vmatpush1.bf16.msra.mxu1 %v3718_v34  ;;  %v4469_v45 = vmax.bf16 %v494_v39, %v486_v35  ;;  %v4471_v46 = vpop.f32.mrb[14].mxu0  ;;  %v424_v33 = vcombine.high %v4445_v7, %v4445_v7  ;;  %v454_v34 = vpack.i.b16 %v4482_v27, %v4482_v27  ;;  %v3781_v35 = vld [vmem:[#allocation8 + $0x580] ss:$16 sps:$4 sm:$0xff]   ;;  %v3796_v7 = vld [vmem:[#allocation8 + $0x5c4] ss:$16 sps:$4 sm:$0xff]  }
 0x168   :  { %2131 = vmatprep.subr.bf16.mxu0 %v3723_v37  ;;  %2221 = vmatprep.subr.bf16.mxu1 %v3726_v38  ;;  %v372_v49 = vpack.c.bf16 %v4471_v46, %v4465_v40  ;;  %v4475_v50 = vpop.f32.mrb[15].mxu0  ;;  %v3784_v37 = vld [vmem:[#allocation8 + $0x1c8] ss:$16 sps:$4 sm:$0xff]   ;;  %v3792_v38 = vld [vmem:[#allocation8 + $0x1ec] ss:$16 sps:$4 sm:$0xff]  }
 0x169   :  { %2159 = vmatprep.mubr.bf16.mxu0 %v4469_v45  ;;  %v373_v51 = vpack.c.bf16 %v4475_v50, %v4467_v41  ;;  %v475_v39 = vpack.i.b16 %v424_v33, %v424_v33  ;;  %v3806_v41 = vld [vmem:[#allocation8 + $0x600] ss:$16 sps:$4 sm:$0xff]   ;;  %v3809_v50 = vld [vmem:[#allocation8 + $0x248] ss:$16 sps:$4 sm:$0xff]   ;;  %v3904_v40 = vld [vmem:[#allocation8 + $0x44c] ss:$16 sps:$4 sm:$0xff]  }
 0x16a   :  { %v3851_v33 = vld [vmem:[#allocation8 + $0x328] ss:$16 sps:$4 sm:$0xff]   ;;  %v3994_v46 = vld [vmem:[#allocation10 + $0x4] ss:$8 sps:$4 sm:$0xff]  }
 0x16b   :  { %2132 = vmatpush1.bf16.msra.mxu0 %v3721_v42  ;;  %2222 = vmatpush1.bf16.msra.mxu1 %v3724_v44  ;;  %v459_v42 = vrot.slane %v454_v34, %v4433_v43  ;;  %v3787_v44 = vld [vmem:[#allocation8 + $0x5a0] ss:$16 sps:$4 sm:$0xff]   ;;  %v3856_v34 = vld [vmem:[#allocation8 + $0x704] ss:$16 sps:$4 sm:$0xff]  }
 0x16c   :  { %2133 = vmatprep.subr.bf16.mxu0 %v3729_v47  ;;  %2223 = vmatprep.subr.bf16.mxu1 %v3732_v48  ;;  %v3790_v47 = vld [vmem:[#allocation8 + $0x1e8] ss:$16 sps:$4 sm:$0xff]   ;;  %v3799_v48 = vld [vmem:[#allocation8 + $0x20c] ss:$16 sps:$4 sm:$0xff]  }
 0x16f   :  { %2134 = vmatpush1.bf16.msra.mxu0 %v3727_v52  ;;  %2224 = vmatpush1.bf16.msra.mxu1 %v3730_v54  ;;  %v480_v52 = vrot.slane %v475_v39, %v4433_v43  ;;  %v485_v54 = vadd.bf16 %v459_v42, %v370_v30  ;;  %v3811_v30 = vld [vmem:[#allocation8 + $0x24c] ss:$16 sps:$4 sm:$0xff]   ;;  %v3860_v42 = vld [vmem:[#allocation8 + $0x720] ss:$16 sps:$4 sm:$0xff]  }
 0x170   :  { %2135 = vmatprep.subr.bf16.mxu0 %v3735_v55  ;;  %2225 = vmatprep.subr.bf16.mxu1 %v3738_v56  ;;  %v3794_v55 = vld [vmem:[#allocation8 + $0x5c0] ss:$16 sps:$4 sm:$0xff]   ;;  %v3797_v56 = vld [vmem:[#allocation8 + $0x208] ss:$16 sps:$4 sm:$0xff]   ;;  %v3865_v39 = vld [vmem:[#allocation8 + $0x36c] ss:$16 sps:$4 sm:$0xff]  }
 0x173   :  { %2136 = vmatpush1.bf16.msra.mxu0 %v3733_v57  ;;  %2226 = vmatpush1.bf16.msra.mxu1 %v3736_v58  ;;  %v3802_v57 = vld [vmem:[#allocation8 + $0x5e4] ss:$16 sps:$4 sm:$0xff]   ;;  %v3805_v58 = vld [vmem:[#allocation8 + $0x22c] ss:$16 sps:$4 sm:$0xff]  }
 0x174   :  { %2137 = vmatprep.subr.bf16.mxu0 %v3741_v59  ;;  %2227 = vmatprep.subr.bf16.mxu1 %v3744_v60  ;;  %v488_v59 = vadd.bf16 %v480_v52, %v373_v51  ;;  %v493_v60 = vmul.bf16 1009007652, %v485_v54  ;;  %v3817_v51 = vld [vmem:[#allocation8 + $0x26c] ss:$16 sps:$4 sm:$0xff]   ;;  %v3869_v52 = vld [vmem:[#allocation8 + $0x388] ss:$16 sps:$4 sm:$0xff]  }
 0x177   :  { %2138 = vmatpush1.bf16.msra.mxu0 %v3739_v61  ;;  %2228 = vmatpush1.bf16.msra.mxu1 %v3742_v62  ;;  %v3800_v61 = vld [vmem:[#allocation8 + $0x5e0] ss:$16 sps:$4 sm:$0xff]   ;;  %v496_v62 = vmul.bf16 1009007652, %v488_v59 }
 0x178   :  { %2139 = vmatprep.subr.bf16.mxu0 %v3747_v63  ;;  %2229 = vmatprep.subr.bf16.mxu1 %v3750_v0  ;;  %v4498_v63 = vmax.bf16 %v493_v60, %v485_v54  ;;  %v3874_v54 = vld [vmem:[#allocation8 + $0x764] ss:$16 sps:$4 sm:$0xff]   ;;  %v3883_v60 = vld [vmem:[#allocation8 + $0x3cc] ss:$16 sps:$4 sm:$0xff]  }
 0x179   :  { %v4500_v0 = vmax.bf16 %v496_v62, %v488_v59  ;;  %v3880_v59 = vld [vmem:[#allocation8 + $0x784] ss:$16 sps:$4 sm:$0xff]   ;;  %v3889_v62 = vld [vmem:[#allocation8 + $0x3ec] ss:$16 sps:$4 sm:$0xff]  }
 0x17b   :  { %2140 = vmatpush1.bf16.msra.mxu0 %v3745_v1  ;;  %2230 = vmatpush1.bf16.msra.mxu1 %v3748_v2  ;;  %v3815_v1 = vld [vmem:[#allocation8 + $0x268] ss:$16 sps:$4 sm:$0xff]   ;;  %v3820_v2 = vld [vmem:[#allocation8 + $0x644] ss:$16 sps:$4 sm:$0xff]  }
 0x17c   :  { %2141 = vmatprep.subr.bf16.mxu0 %v3753_v3  ;;  %2231 = vmatprep.subr.bf16.mxu1 %v3756_v4  ;;  %v3823_v3 = vld [vmem:[#allocation8 + $0x28c] ss:$16 sps:$4 sm:$0xff]   ;;  %v3818_v4 = vld [vmem:[#allocation8 + $0x640] ss:$16 sps:$4 sm:$0xff]  }
 0x17f   :  { %2142 = vmatpush1.bf16.msra.mxu0 %v3751_v5  ;;  %2232 = vmatpush1.bf16.msra.mxu1 %v3754_v6  ;;  %v3821_v5 = vld [vmem:[#allocation8 + $0x288] ss:$16 sps:$4 sm:$0xff]   ;;  %v3826_v6 = vld [vmem:[#allocation8 + $0x664] ss:$16 sps:$4 sm:$0xff]  }
 0x180   :  { %2143 = vmatprep.subr.bf16.mxu0 %v3759_v8  ;;  %2233 = vmatprep.subr.bf16.mxu1 %v3762_v9  ;;  %v3829_v8 = vld [vmem:[#allocation8 + $0x2ac] ss:$16 sps:$4 sm:$0xff]   ;;  %v3824_v9 = vld [vmem:[#allocation8 + $0x660] ss:$16 sps:$4 sm:$0xff]  }
 0x183   :  { %2144 = vmatpush1.bf16.msra.mxu0 %v3757_v11  ;;  %2234 = vmatpush1.bf16.msra.mxu1 %v3760_v12  ;;  %v3827_v11 = vld [vmem:[#allocation8 + $0x2a8] ss:$16 sps:$4 sm:$0xff]   ;;  %v3832_v12 = vld [vmem:[#allocation8 + $0x684] ss:$16 sps:$4 sm:$0xff]  }
 0x184   :  { %2145 = vmatprep.subr.bf16.mxu0 %v3765_v13  ;;  %2235 = vmatprep.subr.bf16.mxu1 %v3768_v14  ;;  %v3835_v13 = vld [vmem:[#allocation8 + $0x2cc] ss:$16 sps:$4 sm:$0xff]   ;;  %v3830_v14 = vld [vmem:[#allocation8 + $0x680] ss:$16 sps:$4 sm:$0xff]  }
 0x187   :  { %2146 = vmatpush1.bf16.msra.mxu0 %v3763_v15  ;;  %2236 = vmatpush1.bf16.msra.mxu1 %v3766_v16  ;;  %v3833_v15 = vld [vmem:[#allocation8 + $0x2c8] ss:$16 sps:$4 sm:$0xff]   ;;  %v3838_v16 = vld [vmem:[#allocation8 + $0x6a4] ss:$16 sps:$4 sm:$0xff]  }
 0x188   :  { %2147 = vmatprep.subr.bf16.mxu0 %v3771_v17  ;;  %2237 = vmatprep.subr.bf16.mxu1 %v3774_v18  ;;  %v3841_v17 = vld [vmem:[#allocation8 + $0x2ec] ss:$16 sps:$4 sm:$0xff]   ;;  %v3836_v18 = vld [vmem:[#allocation8 + $0x6a0] ss:$16 sps:$4 sm:$0xff]  }
 0x18b   :  { %2148 = vmatpush1.bf16.msra.mxu0 %v3769_v19  ;;  %2238 = vmatpush1.bf16.msra.mxu1 %v3772_v22  ;;  %v3839_v19 = vld [vmem:[#allocation8 + $0x2e8] ss:$16 sps:$4 sm:$0xff]   ;;  %v3844_v22 = vld [vmem:[#allocation8 + $0x6c4] ss:$16 sps:$4 sm:$0xff]  }
 0x18c   :  { %2149 = vmatprep.subr.bf16.mxu0 %v3777_v24  ;;  %2239 = vmatprep.subr.bf16.mxu1 %v3780_v25  ;;  %v3847_v24 = vld [vmem:[#allocation8 + $0x30c] ss:$16 sps:$4 sm:$0xff]   ;;  %v3842_v25 = vld [vmem:[#allocation8 + $0x6c0] ss:$16 sps:$4 sm:$0xff]  }
 0x18f   :  { %2150 = vmatpush1.bf16.msra.mxu0 %v3775_v28  ;;  %2240 = vmatpush1.bf16.msra.mxu1 %v3778_v29  ;;  %v3845_v28 = vld [vmem:[#allocation8 + $0x308] ss:$16 sps:$4 sm:$0xff]   ;;  %v3850_v29 = vld [vmem:[#allocation8 + $0x6e4] ss:$16 sps:$4 sm:$0xff]  }
 0x190   :  { %2151 = vmatprep.subr.bf16.mxu0 %v3783_v31  ;;  %2241 = vmatprep.subr.bf16.mxu1 %v3786_v32  ;;  %v3853_v31 = vld [vmem:[#allocation8 + $0x32c] ss:$16 sps:$4 sm:$0xff]   ;;  %v3848_v32 = vld [vmem:[#allocation8 + $0x6e0] ss:$16 sps:$4 sm:$0xff]  }
 0x193   :  { %2152 = vmatpush1.bf16.msra.mxu0 %v3781_v35  ;;  %2242 = vmatpush1.bf16.msra.mxu1 %v3784_v37  ;;  %v3859_v35 = vld [vmem:[#allocation8 + $0x34c] ss:$16 sps:$4 sm:$0xff]   ;;  %v3854_v37 = vld [vmem:[#allocation8 + $0x700] ss:$16 sps:$4 sm:$0xff]  }
 0x194   :  { %2153 = vmatprep.subr.bf16.mxu0 %v3789_v53  ;;  %2243 = vmatprep.subr.bf16.mxu1 %v3792_v38  ;;  %v3857_v53 = vld [vmem:[#allocation8 + $0x348] ss:$16 sps:$4 sm:$0xff]   ;;  %v3862_v38 = vld [vmem:[#allocation8 + $0x724] ss:$16 sps:$4 sm:$0xff]  }
 0x197   :  { %2154 = vmatpush1.bf16.msra.mxu0 %v3787_v44  ;;  %2244 = vmatpush1.bf16.msra.mxu1 %v3790_v47  ;;  %v3863_v44 = vld [vmem:[#allocation8 + $0x368] ss:$16 sps:$4 sm:$0xff]   ;;  %v3868_v47 = vld [vmem:[#allocation8 + $0x744] ss:$16 sps:$4 sm:$0xff]  }
 0x198   :  { %2155 = vmatprep.subr.bf16.mxu0 %v3796_v7  ;;  %2256 = vmatprep.subr.bf16.mxu1 %v3799_v48  ;;  %v3871_v7 = vld [vmem:[#allocation8 + $0x38c] ss:$16 sps:$4 sm:$0xff]   ;;  %v3866_v48 = vld [vmem:[#allocation8 + $0x740] ss:$16 sps:$4 sm:$0xff]  }
 0x19a   :  { %2246 = vmatmul.mubr.bf16.vlgmr.msra.gmra.mrb[4].mxu1 %v4447_v10  ;;  %v3814_v10 = vld [vmem:[#allocation8 + $0x624] ss:$16 sps:$4 sm:$0xff]  }
 0x19b   :  { %2156 = vmatpush1.bf16.msra.mxu0 %v3794_v55  ;;  %2257 = vmatpush1.bf16.msra.mxu1 %v3797_v56  ;;  %v3877_v55 = vld [vmem:[#allocation8 + $0x3ac] ss:$16 sps:$4 sm:$0xff]   ;;  %v422_v56 = vcombine.high %v4482_v27, %v4482_v27  ;;  %v3884_v27 = vld [vmem:[#allocation8 + $0x7a0] ss:$16 sps:$4 sm:$0xff]  }
 0x19c   :  { %2288 = vmatprep.mubr.bf16.mxu1 %v4456_v23  ;;  %2157 = vmatprep.subr.bf16.mxu0 %v3802_v57  ;;  %v3812_v23 = vld [vmem:[#allocation8 + $0x620] ss:$16 sps:$4 sm:$0xff]  }
 0x19d   :  { %2258 = vmatprep.subr.bf16.mxu1 %v3805_v58  ;;  %v3872_v57 = vld [vmem:[#allocation8 + $0x760] ss:$16 sps:$4 sm:$0xff]   ;;  %v3875_v58 = vld [vmem:[#allocation8 + $0x3a8] ss:$16 sps:$4 sm:$0xff]  }
 0x19f   :  { %2158 = vmatpush1.bf16.msra.mxu0 %v3800_v61  ;;  %2259 = vmatpush1.bf16.msra.mxu1 %v3803_v20  ;;  %v468_v61 = vpack.i.b16 %v422_v56, %v422_v56  ;;  %v3878_v20 = vld [vmem:[#allocation8 + $0x780] ss:$16 sps:$4 sm:$0xff]   ;;  %v3931_v56 = vld [vmem:[#allocation8 + $0x56c] ss:$16 sps:$4 sm:$0xff]  }
 0x1a0   :  { %2170 = vmatprep.subr.bf16.mxu0 %v3808_v26  ;;  %2260 = vmatprep.subr.bf16.mxu1 %v3811_v30  ;;  %v3881_v26 = vld [vmem:[#allocation8 + $0x3c8] ss:$16 sps:$4 sm:$0xff]   ;;  %v3886_v30 = vld [vmem:[#allocation8 + $0x7a4] ss:$16 sps:$4 sm:$0xff]  }
 0x1a2   :  { %2160 = vmatmul.mubr.bf16.vlgmr.msra.gmra.mrb[16].mxu0 %v4498_v63 }
 0x1a3   :  { %2171 = vmatpush1.bf16.msra.mxu0 %v3806_v41  ;;  %2261 = vmatpush1.bf16.msra.mxu1 %v3809_v50  ;;  %v473_v41 = vrot.slane %v468_v61, %v4433_v43  ;;  %v3887_v50 = vld [vmem:[#allocation8 + $0x3e8] ss:$16 sps:$4 sm:$0xff]   ;;  %v4024_v61 = vld [vmem:[#allocation10 + $0xa4] ss:$8 sps:$4 sm:$0xff]  }
 0x1a4   :  { %2172 = vmatprep.subr.bf16.mxu0 %v3814_v10  ;;  %2262 = vmatprep.subr.bf16.mxu1 %v3817_v51  ;;  %v3892_v10 = vld [vmem:[#allocation8 + $0x7c4] ss:$16 sps:$4 sm:$0xff]   ;;  %v3895_v51 = vld [vmem:[#allocation8 + $0x40c] ss:$16 sps:$4 sm:$0xff]  }
 0x1a5   :  { %2202 = vmatprep.mubr.bf16.mxu0 %v4500_v0 }
 0x1a7   :  { %2173 = vmatpush1.bf16.msra.mxu0 %v3812_v23  ;;  %2263 = vmatpush1.bf16.msra.mxu1 %v3815_v1  ;;  %v487_v23 = vadd.bf16 %v473_v41, %v372_v49  ;;  %v3890_v1 = vld [vmem:[#allocation8 + $0x7c0] ss:$16 sps:$4 sm:$0xff]   ;;  %v3935_v41 = vld [vmem:[#allocation8 + $0x5a8] ss:$16 sps:$4 sm:$0xff]  }
 0x1a8   :  { %2174 = vmatprep.subr.bf16.mxu0 %v3820_v2  ;;  %2264 = vmatprep.subr.bf16.mxu1 %v3823_v3  ;;  %v3893_v2 = vld [vmem:[#allocation8 + $0x408] ss:$16 sps:$4 sm:$0xff]   ;;  %v3898_v3 = vld [vmem:[#allocation8 + $0x7e4] ss:$16 sps:$4 sm:$0xff]  }
 0x1ab   :  { %2175 = vmatpush1.bf16.msra.mxu0 %v3818_v4  ;;  %2265 = vmatpush1.bf16.msra.mxu1 %v3821_v5  ;;  %v3901_v4 = vld [vmem:[#allocation8 + $0x42c] ss:$16 sps:$4 sm:$0xff]   ;;  %v495_v5 = vmul.bf16 1009007652, %v487_v23 }
 0x1ac   :  { %2176 = vmatprep.subr.bf16.mxu0 %v3826_v6  ;;  %2266 = vmatprep.subr.bf16.mxu1 %v3829_v8  ;;  %v3896_v6 = vld [vmem:[#allocation8 + $0x7e0] ss:$16 sps:$4 sm:$0xff]   ;;  %v3899_v8 = vld [vmem:[#allocation8 + $0x428] ss:$16 sps:$4 sm:$0xff]  }
 0x1ad   :  { %v4512_v49 = vmax.bf16 %v495_v5, %v487_v23  ;;  %v4028_v23 = vld [vmem:[#allocation10 + $0xc0] ss:$8 sps:$4 sm:$0xff]   ;;  %v3949_v5 = vld [vmem:[#allocation8 + $0x62c] ss:$16 sps:$4 sm:$0xff]  }
 0x1af   :  { %2177 = vmatpush1.bf16.msra.mxu0 %v3824_v9  ;;  %2267 = vmatpush1.bf16.msra.mxu1 %v3827_v11  ;;  %v3902_v9 = vld [vmem:[#allocation8 + $0x448] ss:$16 sps:$4 sm:$0xff]  }
 0x1b0   :  { %2178 = vmatprep.subr.bf16.mxu0 %v3832_v12  ;;  %2268 = vmatprep.subr.bf16.mxu1 %v3835_v13  ;;  %v3992_v11 = vld [vmem:[#allocation10] ss:$8 sps:$4 sm:$0xff]   ;;  %v3907_v12 = vld [vmem:[#allocation8 + $0x46c] ss:$16 sps:$4 sm:$0xff]  }
 0x1b1   :  { %v3905_v13 = vld [vmem:[#allocation8 + $0x468] ss:$16 sps:$4 sm:$0xff]  }
 0x1b3   :  { %2179 = vmatpush1.bf16.msra.mxu0 %v3830_v14  ;;  %2269 = vmatpush1.bf16.msra.mxu1 %v3833_v15  ;;  %v3910_v14 = vld [vmem:[#allocation8 + $0x48c] ss:$16 sps:$4 sm:$0xff]  }
 0x1b4   :  { %2180 = vmatprep.subr.bf16.mxu0 %v3838_v16  ;;  %2270 = vmatprep.subr.bf16.mxu1 %v3841_v17  ;;  %v4000_v15 = vld [vmem:[#allocation10 + $0x24] ss:$8 sps:$4 sm:$0xff]   ;;  %v3908_v16 = vld [vmem:[#allocation8 + $0x488] ss:$16 sps:$4 sm:$0xff]  }
 0x1b5   :  { %v3998_v17 = vld [vmem:[#allocation10 + $0x20] ss:$8 sps:$4 sm:$0xff]  }
 0x1b7   :  { %2181 = vmatpush1.bf16.msra.mxu0 %v3836_v18  ;;  %2271 = vmatpush1.bf16.msra.mxu1 %v3839_v19  ;;  %v3913_v18 = vld [vmem:[#allocation8 + $0x4ac] ss:$16 sps:$4 sm:$0xff]  }
 0x1b8   :  { %2182 = vmatprep.subr.bf16.mxu0 %v3844_v22  ;;  %2272 = vmatprep.subr.bf16.mxu1 %v3847_v24  ;;  %v4003_v19 = vld [vmem:[#allocation10 + $0x34] ss:$8 sps:$4 sm:$0xff]   ;;  %v3911_v22 = vld [vmem:[#allocation8 + $0x4a8] ss:$16 sps:$4 sm:$0xff]  }
 0x1b9   :  { %v4001_v24 = vld [vmem:[#allocation10 + $0x30] ss:$8 sps:$4 sm:$0xff]  }
 0x1bb   :  { %2183 = vmatpush1.bf16.msra.mxu0 %v3842_v25  ;;  %2273 = vmatpush1.bf16.msra.mxu1 %v3845_v28  ;;  %v3916_v25 = vld [vmem:[#allocation8 + $0x4cc] ss:$16 sps:$4 sm:$0xff]  }
 0x1bc   :  { %2184 = vmatprep.subr.bf16.mxu0 %v3850_v29  ;;  %2274 = vmatprep.subr.bf16.mxu1 %v3853_v31  ;;  %v4006_v28 = vld [vmem:[#allocation10 + $0x44] ss:$8 sps:$4 sm:$0xff]   ;;  %v3914_v29 = vld [vmem:[#allocation8 + $0x4c8] ss:$16 sps:$4 sm:$0xff]  }
 0x1bd   :  { %v4004_v31 = vld [vmem:[#allocation10 + $0x40] ss:$8 sps:$4 sm:$0xff]  }
 0x1bf   :  { %2185 = vmatpush1.bf16.msra.mxu0 %v3848_v32  ;;  %2275 = vmatpush1.bf16.msra.mxu1 %v3851_v33  ;;  %v3919_v32 = vld [vmem:[#allocation8 + $0x4ec] ss:$16 sps:$4 sm:$0xff]  }
 0x1c0   :  { %2186 = vmatprep.subr.bf16.mxu0 %v3856_v34  ;;  %2276 = vmatprep.subr.bf16.mxu1 %v3859_v35  ;;  %v4009_v33 = vld [vmem:[#allocation10 + $0x54] ss:$8 sps:$4 sm:$0xff]   ;;  %v3917_v34 = vld [vmem:[#allocation8 + $0x4e8] ss:$16 sps:$4 sm:$0xff]  }
 0x1c1   :  { %v4007_v35 = vld [vmem:[#allocation10 + $0x50] ss:$8 sps:$4 sm:$0xff]  }
 0x1c3   :  { %2187 = vmatpush1.bf16.msra.mxu0 %v3854_v37  ;;  %2277 = vmatpush1.bf16.msra.mxu1 %v3857_v53  ;;  %v3922_v37 = vld [vmem:[#allocation8 + $0x50c] ss:$16 sps:$4 sm:$0xff]  }
 0x1c4   :  { %2188 = vmatprep.subr.bf16.mxu0 %v3862_v38  ;;  %2278 = vmatprep.subr.bf16.mxu1 %v3865_v39  ;;  %v4012_v53 = vld [vmem:[#allocation10 + $0x64] ss:$8 sps:$4 sm:$0xff]   ;;  %v3920_v38 = vld [vmem:[#allocation8 + $0x508] ss:$16 sps:$4 sm:$0xff]  }
 0x1c5   :  { %v4010_v39 = vld [vmem:[#allocation10 + $0x60] ss:$8 sps:$4 sm:$0xff]  }
 0x1c7   :  { %2189 = vmatpush1.bf16.msra.mxu0 %v3860_v42  ;;  %2279 = vmatpush1.bf16.msra.mxu1 %v3863_v44  ;;  %v3925_v42 = vld [vmem:[#allocation8 + $0x52c] ss:$16 sps:$4 sm:$0xff]  }
 0x1c8   :  { %2190 = vmatprep.subr.bf16.mxu0 %v3868_v47  ;;  %2280 = vmatprep.subr.bf16.mxu1 %v3871_v7  ;;  %v4015_v44 = vld [vmem:[#allocation10 + $0x74] ss:$8 sps:$4 sm:$0xff]   ;;  %v3923_v47 = vld [vmem:[#allocation8 + $0x528] ss:$16 sps:$4 sm:$0xff]  }
 0x1c9   :  { %v4013_v7 = vld [vmem:[#allocation10 + $0x70] ss:$8 sps:$4 sm:$0xff]  }
 0x1cb   :  { %2191 = vmatpush1.bf16.msra.mxu0 %v3866_v48  ;;  %2281 = vmatpush1.bf16.msra.mxu1 %v3869_v52  ;;  %v3928_v48 = vld [vmem:[#allocation8 + $0x54c] ss:$16 sps:$4 sm:$0xff]  }
 0x1cc   :  { %2192 = vmatprep.subr.bf16.mxu0 %v3874_v54  ;;  %2282 = vmatprep.subr.bf16.mxu1 %v3877_v55  ;;  %v4018_v52 = vld [vmem:[#allocation10 + $0x84] ss:$8 sps:$4 sm:$0xff]   ;;  %v3926_v54 = vld [vmem:[#allocation8 + $0x548] ss:$16 sps:$4 sm:$0xff]  }
 0x1cd   :  { %v4016_v55 = vld [vmem:[#allocation10 + $0x80] ss:$8 sps:$4 sm:$0xff]  }
 0x1cf   :  { %2193 = vmatpush1.bf16.msra.mxu0 %v3872_v57  ;;  %2283 = vmatpush1.bf16.msra.mxu1 %v3875_v58  ;;  %v4021_v57 = vld [vmem:[#allocation10 + $0x94] ss:$8 sps:$4 sm:$0xff]   ;;  %v3929_v58 = vld [vmem:[#allocation8 + $0x568] ss:$16 sps:$4 sm:$0xff]  }
 0x1d0   :  { %2194 = vmatprep.subr.bf16.mxu0 %v3880_v59  ;;  %2284 = vmatprep.subr.bf16.mxu1 %v3883_v60  ;;  %v4019_v59 = vld [vmem:[#allocation10 + $0x90] ss:$8 sps:$4 sm:$0xff]   ;;  %v3934_v60 = vld [vmem:[#allocation8 + $0x58c] ss:$16 sps:$4 sm:$0xff]  }
 0x1d3   :  { %2195 = vmatpush1.bf16.msra.mxu0 %v3878_v20  ;;  %2285 = vmatpush1.bf16.msra.mxu1 %v3881_v26  ;;  %v3932_v20 = vld [vmem:[#allocation8 + $0x588] ss:$16 sps:$4 sm:$0xff]  }
 0x1d4   :  { %2196 = vmatprep.subr.bf16.mxu0 %v3886_v30  ;;  %2286 = vmatprep.subr.bf16.mxu1 %v3889_v62  ;;  %v4022_v26 = vld [vmem:[#allocation10 + $0xa0] ss:$8 sps:$4 sm:$0xff]   ;;  %v3937_v30 = vld [vmem:[#allocation8 + $0x5ac] ss:$16 sps:$4 sm:$0xff]  }
 0x1d5   :  { %v4027_v62 = vld [vmem:[#allocation10 + $0xb4] ss:$8 sps:$4 sm:$0xff]  }
 0x1d7   :  { %2197 = vmatpush1.bf16.msra.mxu0 %v3884_v27  ;;  %2287 = vmatpush1.bf16.msra.mxu1 %v3887_v50  ;;  %v4025_v27 = vld [vmem:[#allocation10 + $0xb0] ss:$8 sps:$4 sm:$0xff]   ;;  %v3940_v50 = vld [vmem:[#allocation8 + $0x5cc] ss:$16 sps:$4 sm:$0xff]  }
 0x1d8   :  { %2198 = vmatprep.subr.bf16.mxu0 %v3892_v10  ;;  %2299 = vmatprep.subr.bf16.mxu1 %v3895_v51  ;;  %v4030_v10 = vld [vmem:[#allocation10 + $0xc4] ss:$8 sps:$4 sm:$0xff]   ;;  %v3938_v51 = vld [vmem:[#allocation8 + $0x5c8] ss:$16 sps:$4 sm:$0xff]  }
 0x1da   :  { %2289 = vmatmul.mubr.bf16.vlgmr.msra.gmra.mrb[4].mxu1 %v4454_v21  ;;  %v3997_v21 = vld [vmem:[#allocation10 + $0x14] ss:$8 sps:$4 sm:$0xff]  }
 0x1db   :  { %2199 = vmatpush1.bf16.msra.mxu0 %v3890_v1  ;;  %2300 = vmatpush1.bf16.msra.mxu1 %v3893_v2  ;;  %v3943_v1 = vld [vmem:[#allocation8 + $0x5ec] ss:$16 sps:$4 sm:$0xff]   ;;  %v3941_v2 = vld [vmem:[#allocation8 + $0x5e8] ss:$16 sps:$4 sm:$0xff]  }
 0x1dc   :  { %2331 = vmatprep.mubr.bf16.mxu1 %v4469_v45  ;;  %2200 = vmatprep.subr.bf16.mxu0 %v3898_v3  ;;  %v3995_v45 = vld [vmem:[#allocation10 + $0x10] ss:$8 sps:$4 sm:$0xff]   ;;  %v3946_v3 = vld [vmem:[#allocation8 + $0x60c] ss:$16 sps:$4 sm:$0xff]  }
 0x1dd   :  { %2301 = vmatprep.subr.bf16.mxu1 %v3901_v4  ;;  %v3944_v4 = vld [vmem:[#allocation8 + $0x608] ss:$16 sps:$4 sm:$0xff]  }
 0x1df   :  { %2201 = vmatpush1.bf16.msra.mxu0 %v3896_v6  ;;  %2302 = vmatpush1.bf16.msra.mxu1 %v3899_v8  ;;  %v3947_v6 = vld [vmem:[#allocation8 + $0x628] ss:$16 sps:$4 sm:$0xff]   ;;  %v3952_v8 = vld [vmem:[#allocation8 + $0x64c] ss:$16 sps:$4 sm:$0xff]  }
 0x1e0   :  { %2303 = vmatprep.subr.bf16.mxu1 %v3904_v40  ;;  %2839 = vmatprep.subr.bf16.mxu0 %v3994_v46  ;;  %v3950_v40 = vld [vmem:[#allocation8 + $0x648] ss:$16 sps:$4 sm:$0xff]   ;;  %v3955_v46 = vld [vmem:[#allocation8 + $0x66c] ss:$16 sps:$4 sm:$0xff]  }
 0x1e2   :  { %2203 = vmatmul.mubr.bf16.vlgmr.msra.gmra.mrb[16].mxu0 %v4512_v49 }
 0x1e3   :  { %2304 = vmatpush1.bf16.msra.mxu1 %v3902_v9  ;;  %2840 = vmatpush1.bf16.msra.mxu0 %v3992_v11  ;;  %v3953_v9 = vld [vmem:[#allocation8 + $0x668] ss:$16 sps:$4 sm:$0xff]   ;;  %v3958_v11 = vld [vmem:[#allocation8 + $0x68c] ss:$16 sps:$4 sm:$0xff]  }
 0x1e4   :  { %2305 = vmatprep.subr.bf16.mxu1 %v3907_v12  ;;  %2841 = vmatprep.subr.bf16.mxu0 %v3997_v21  ;;  %v3956_v12 = vld [vmem:[#allocation8 + $0x688] ss:$16 sps:$4 sm:$0xff]   ;;  %v3961_v21 = vld [vmem:[#allocation8 + $0x6ac] ss:$16 sps:$4 sm:$0xff]  }
 0x1e7   :  { %2306 = vmatpush1.bf16.msra.mxu1 %v3905_v13  ;;  %2842 = vmatpush1.bf16.msra.mxu0 %v3995_v45  ;;  %v3964_v13 = vld [vmem:[#allocation8 + $0x6cc] ss:$16 sps:$4 sm:$0xff]  }
 0x1e8   :  { %2307 = vmatprep.subr.bf16.mxu1 %v3910_v14  ;;  %2843 = vmatprep.subr.bf16.mxu0 %v4000_v15  ;;  %v3962_v15 = vld [vmem:[#allocation8 + $0x6c8] ss:$16 sps:$4 sm:$0xff]  }
 0x1eb   :  { %2308 = vmatpush1.bf16.msra.mxu1 %v3908_v16  ;;  %2844 = vmatpush1.bf16.msra.mxu0 %v3998_v17  ;;  %v3967_v17 = vld [vmem:[#allocation8 + $0x6ec] ss:$16 sps:$4 sm:$0xff]  }
 0x1ec   :  { %2309 = vmatprep.subr.bf16.mxu1 %v3913_v18  ;;  %2845 = vmatprep.subr.bf16.mxu0 %v4003_v19  ;;  %v3965_v18 = vld [vmem:[#allocation8 + $0x6e8] ss:$16 sps:$4 sm:$0xff]   ;;  %v3970_v19 = vld [vmem:[#allocation8 + $0x70c] ss:$16 sps:$4 sm:$0xff]  }
 0x1ef   :  { %2310 = vmatpush1.bf16.msra.mxu1 %v3911_v22  ;;  %2846 = vmatpush1.bf16.msra.mxu0 %v4001_v24  ;;  %v3968_v22 = vld [vmem:[#allocation8 + $0x708] ss:$16 sps:$4 sm:$0xff]   ;;  %v4033_v24 = vld [vmem:[#allocation10 + $0xd4] ss:$8 sps:$4 sm:$0xff]  }
 0x1f0   :  { %2311 = vmatprep.subr.bf16.mxu1 %v3916_v25  ;;  %2847 = vmatprep.subr.bf16.mxu0 %v4006_v28  ;;  %v3973_v25 = vld [vmem:[#allocation8 + $0x72c] ss:$16 sps:$4 sm:$0xff]   ;;  %v4031_v28 = vld [vmem:[#allocation10 + $0xd0] ss:$8 sps:$4 sm:$0xff]  }
 0x1f3   :  { %2312 = vmatpush1.bf16.msra.mxu1 %v3914_v29  ;;  %2848 = vmatpush1.bf16.msra.mxu0 %v4004_v31  ;;  %v3971_v29 = vld [vmem:[#allocation8 + $0x728] ss:$16 sps:$4 sm:$0xff]   ;;  %v4036_v31 = vld [vmem:[#allocation10 + $0xe4] ss:$8 sps:$4 sm:$0xff]  }
 0x1f4   :  { %2313 = vmatprep.subr.bf16.mxu1 %v3919_v32  ;;  %2849 = vmatprep.subr.bf16.mxu0 %v4009_v33  ;;  %v3976_v32 = vld [vmem:[#allocation8 + $0x74c] ss:$16 sps:$4 sm:$0xff]   ;;  %v4034_v33 = vld [vmem:[#allocation10 + $0xe0] ss:$8 sps:$4 sm:$0xff]  }
 0x1f7   :  { %2314 = vmatpush1.bf16.msra.mxu1 %v3917_v34  ;;  %2850 = vmatpush1.bf16.msra.mxu0 %v4007_v35  ;;  %v3974_v34 = vld [vmem:[#allocation8 + $0x748] ss:$16 sps:$4 sm:$0xff]   ;;  %v4039_v35 = vld [vmem:[#allocation10 + $0xf4] ss:$8 sps:$4 sm:$0xff]  }
 0x1f8   :  { %2315 = vmatprep.subr.bf16.mxu1 %v3922_v37  ;;  %2851 = vmatprep.subr.bf16.mxu0 %v4012_v53  ;;  %v3979_v37 = vld [vmem:[#allocation8 + $0x76c] ss:$16 sps:$4 sm:$0xff]   ;;  %v4037_v53 = vld [vmem:[#allocation10 + $0xf0] ss:$8 sps:$4 sm:$0xff]  }
 0x1fb   :  { %2316 = vmatpush1.bf16.msra.mxu1 %v3920_v38  ;;  %2852 = vmatpush1.bf16.msra.mxu0 %v4010_v39  ;;  %v3977_v38 = vld [vmem:[#allocation8 + $0x768] ss:$16 sps:$4 sm:$0xff]   ;;  %v3982_v39 = vld [vmem:[#allocation8 + $0x78c] ss:$16 sps:$4 sm:$0xff]  }
 0x1fc   :  { %2317 = vmatprep.subr.bf16.mxu1 %v3925_v42  ;;  %2853 = vmatprep.subr.bf16.mxu0 %v4015_v44  ;;  %v4042_v42 = vld [vmem:[#allocation10 + $0x104] ss:$8 sps:$4 sm:$0xff]   ;;  %v3980_v44 = vld [vmem:[#allocation8 + $0x788] ss:$16 sps:$4 sm:$0xff]  }
 0x1ff   :  { %2318 = vmatpush1.bf16.msra.mxu1 %v3923_v47  ;;  %2854 = vmatpush1.bf16.msra.mxu0 %v4013_v7  ;;  %v3985_v47 = vld [vmem:[#allocation8 + $0x7ac] ss:$16 sps:$4 sm:$0xff]   ;;  %v3983_v7 = vld [vmem:[#allocation8 + $0x7a8] ss:$16 sps:$4 sm:$0xff]  }
 0x200   :  { %2319 = vmatprep.subr.bf16.mxu1 %v3928_v48  ;;  %2855 = vmatprep.subr.bf16.mxu0 %v4018_v52  ;;  %v3988_v48 = vld [vmem:[#allocation8 + $0x7cc] ss:$16 sps:$4 sm:$0xff]   ;;  %v3986_v52 = vld [vmem:[#allocation8 + $0x7c8] ss:$16 sps:$4 sm:$0xff]  }
 0x203   :  { %2320 = vmatpush1.bf16.msra.mxu1 %v3926_v54  ;;  %2856 = vmatpush1.bf16.msra.mxu0 %v4016_v55  ;;  %v3991_v54 = vld [vmem:[#allocation8 + $0x7ec] ss:$16 sps:$4 sm:$0xff]   ;;  %v3989_v55 = vld [vmem:[#allocation8 + $0x7e8] ss:$16 sps:$4 sm:$0xff]  }
 0x204   :  { %2321 = vmatprep.subr.bf16.mxu1 %v3931_v56  ;;  %2857 = vmatprep.subr.bf16.mxu0 %v4021_v57  ;;  %v3446_v56 = vld.sshfl [vmem:[%s4580_s4] sm:$0x33 pattern:$0x75316420] }
 0x205   :  { %v2398_v57 = vcombine.high %v3446_v56, %v3446_v56 }
 0x207   :  { %2322 = vmatpush1.bf16.msra.mxu1 %v3929_v58  ;;  %2858 = vmatpush1.bf16.msra.mxu0 %v4019_v59  ;;  %v4530_v58 = vrot.slane %v3446_v56, %v4428_v36  ;;  %v4533_v59 = vrot.slane %v2398_v57, %v4428_v36  ;;  %v4082_v56 = vld [vmem:[#allocation10 + $0x1e0] ss:$8 sps:$4 sm:$0xff]   ;;  %v4087_v57 = vld [vmem:[#allocation10 + $0x1f4] ss:$8 sps:$4 sm:$0xff]  }
 0x208   :  { %2323 = vmatprep.subr.bf16.mxu1 %v3934_v60  ;;  %2859 = vmatprep.subr.bf16.mxu0 %v4024_v61 }
 0x209   :  { %v2416_v60 = vpack.i.b16 %v4530_v58, %v4530_v58 }
 0x20b   :  { %2324 = vmatpush1.bf16.msra.mxu1 %v3932_v20  ;;  %2860 = vmatpush1.bf16.msra.mxu0 %v4022_v26  ;;  %v2423_v20 = vpack.i.b16 %v4533_v59, %v4533_v59 }
 0x20c   :  { %2325 = vmatprep.subr.bf16.mxu1 %v3937_v30  ;;  %2861 = vmatprep.subr.bf16.mxu0 %v4027_v62 }
 0x20f   :  { %2326 = vmatpush1.bf16.msra.mxu1 %v3935_v41  ;;  %2862 = vmatpush1.bf16.msra.mxu0 %v4025_v27  ;;  %v2421_v27 = vrot.slane %v2416_v60, %v4433_v43  ;;  %v4085_v60 = vld [vmem:[#allocation10 + $0x1f0] ss:$8 sps:$4 sm:$0xff]  }
 0x210   :  { %2327 = vmatprep.subr.bf16.mxu1 %v3940_v50  ;;  %2863 = vmatprep.subr.bf16.mxu0 %v4030_v10 }
 0x213   :  { %2328 = vmatpush1.bf16.msra.mxu1 %v3938_v51  ;;  %2864 = vmatpush1.bf16.msra.mxu0 %v4028_v23  ;;  %v2428_v51 = vrot.slane %v2423_v20, %v4433_v43  ;;  %v2414_v20 = vcombine.high %v4533_v59, %v4533_v59  ;;  %v4098_v59 = vld [vmem:[#allocation11 + $0x68] sm:$0xff]  }
 0x214   :  { %2329 = vmatprep.subr.bf16.mxu1 %v3943_v1  ;;  %2865 = vmatprep.subr.bf16.mxu0 %v4033_v24  ;;  %v4088_v1 = vld [vmem:[#allocation11 + $0x40] sm:$0xff]  }
 0x215   :  { %v4054_v24 = vld [vmem:[#allocation10 + $0x144] ss:$8 sps:$4 sm:$0xff]  }
 0x217   :  { %2330 = vmatpush1.bf16.msra.mxu1 %v3941_v2  ;;  %2866 = vmatpush1.bf16.msra.mxu0 %v4031_v28  ;;  %v4089_v2 = vld [vmem:[#allocation11] sm:$0xff]   ;;  %v4057_v28 = vld [vmem:[#allocation10 + $0x154] ss:$8 sps:$4 sm:$0xff]  }
 0x218   :  { %2342 = vmatprep.subr.bf16.mxu1 %v3946_v3  ;;  %2867 = vmatprep.subr.bf16.mxu0 %v4036_v31  ;;  %v4090_v3 = vld [vmem:[#allocation11 + $0x48] sm:$0xff]  }
 0x219   :  { %v4060_v31 = vld [vmem:[#allocation10 + $0x164] ss:$8 sps:$4 sm:$0xff]  }
 0x21a   :  { %2332 = vmatmul.mubr.bf16.vlgmr.msra.gmra.mrb[4].mxu1 %v4498_v63  ;;  %v3959_v63 = vld [vmem:[#allocation8 + $0x6a8] ss:$16 sps:$4 sm:$0xff]  }
 0x21b   :  { %2343 = vmatpush1.bf16.msra.mxu1 %v3944_v4  ;;  %2374 = vmatprep.mubr.bf16.mxu1 %v4500_v0 }
 0x21c   :  { %2344 = vmatprep.subr.bf16.mxu1 %v3949_v5  ;;  %2868 = vmatpush1.bf16.msra.mxu0 %v4034_v33  ;;  %v4063_v33 = vld [vmem:[#allocation10 + $0x174] ss:$8 sps:$4 sm:$0xff]  }
 0x21d   :  { %2869 = vmatprep.subr.bf16.mxu0 %v4039_v35  ;;  %v4066_v35 = vld [vmem:[#allocation10 + $0x184] ss:$8 sps:$4 sm:$0xff]  }
 0x21f   :  { %2345 = vmatpush1.bf16.msra.mxu1 %v3947_v6 }
 0x220   :  { %2346 = vmatprep.subr.bf16.mxu1 %v3952_v8  ;;  %2870 = vmatpush1.bf16.msra.mxu0 %v4037_v53  ;;  %v4091_v8 = vld [vmem:[#allocation11 + $0x8] sm:$0xff]   ;;  %v4069_v53 = vld [vmem:[#allocation10 + $0x194] ss:$8 sps:$4 sm:$0xff]  }
 0x221   :  { %2882 = vmatprep.subr.bf16.mxu0 %v4042_v42  ;;  %v4070_v42 = vld [vmem:[#allocation10 + $0x1a0] ss:$8 sps:$4 sm:$0xff]  }
 0x223   :  { %2347 = vmatpush1.bf16.msra.mxu1 %v3950_v40 }
 0x224   :  { %2348 = vmatprep.subr.bf16.mxu1 %v3955_v46  ;;  %v4092_v46 = vld [vmem:[#allocation11 + $0x50] sm:$0xff]  }
 0x227   :  { %2349 = vmatpush1.bf16.msra.mxu1 %v3953_v9 }
 0x228   :  { %2350 = vmatprep.subr.bf16.mxu1 %v3958_v11 }
 0x22b   :  { %2351 = vmatpush1.bf16.msra.mxu1 %v3956_v12  ;;  %v4040_v12 = vld [vmem:[#allocation10 + $0x100] ss:$8 sps:$4 sm:$0xff]  }
 0x22c   :  { %2352 = vmatprep.subr.bf16.mxu1 %v3961_v21  ;;  %v4093_v21 = vld [vmem:[#allocation11 + $0x10] sm:$0xff]  }
 0x22d   :  { %v4517_v0 = vpop.f32.mrb[0].mxu1 }
 0x22e   :  { %v4519_v45 = vpop.f32.mrb[1].mxu1 }
 0x22f   :  { %2353 = vmatpush1.bf16.msra.mxu1 %v3959_v63  ;;  %v4521_v14 = vpop.f32.mrb[2].mxu1 }
 0x230   :  { %v4523_v16 = vpop.f32.mrb[3].mxu1  ;;  %2354 = vmatprep.subr.bf16.mxu1 %v3964_v13  ;;  %v4045_v13 = vld [vmem:[#allocation10 + $0x114] ss:$8 sps:$4 sm:$0xff]  }
 0x233   :  { %2355 = vmatpush1.bf16.msra.mxu1 %v3962_v15  ;;  %v4048_v15 = vld [vmem:[#allocation10 + $0x124] ss:$8 sps:$4 sm:$0xff]  }
 0x234   :  { %2356 = vmatprep.subr.bf16.mxu1 %v3967_v17  ;;  %v4046_v17 = vld [vmem:[#allocation10 + $0x120] ss:$8 sps:$4 sm:$0xff]  }
 0x237   :  { %2357 = vmatpush1.bf16.msra.mxu1 %v3965_v18  ;;  %v4097_v18 = vld [vmem:[#allocation11 + $0x20] sm:$0xff]  }
 0x238   :  { %2358 = vmatprep.subr.bf16.mxu1 %v3970_v19  ;;  %v4051_v19 = vld [vmem:[#allocation10 + $0x134] ss:$8 sps:$4 sm:$0xff]  }
 0x23b   :  { %2359 = vmatpush1.bf16.msra.mxu1 %v3968_v22  ;;  %v4049_v22 = vld [vmem:[#allocation10 + $0x130] ss:$8 sps:$4 sm:$0xff]  }
 0x23c   :  { %2360 = vmatprep.subr.bf16.mxu1 %v3973_v25  ;;  %v4052_v25 = vld [vmem:[#allocation10 + $0x140] ss:$8 sps:$4 sm:$0xff]  }
 0x23f   :  { %2361 = vmatpush1.bf16.msra.mxu1 %v3971_v29  ;;  %v4055_v29 = vld [vmem:[#allocation10 + $0x150] ss:$8 sps:$4 sm:$0xff]  }
 0x240   :  { %2362 = vmatprep.subr.bf16.mxu1 %v3976_v32  ;;  %v4058_v32 = vld [vmem:[#allocation10 + $0x160] ss:$8 sps:$4 sm:$0xff]  }
 0x243   :  { %2363 = vmatpush1.bf16.msra.mxu1 %v3974_v34  ;;  %v4061_v34 = vld [vmem:[#allocation10 + $0x170] ss:$8 sps:$4 sm:$0xff]  }
 0x244   :  { %2364 = vmatprep.subr.bf16.mxu1 %v3979_v37  ;;  %v4064_v37 = vld [vmem:[#allocation10 + $0x180] ss:$8 sps:$4 sm:$0xff]  }
 0x247   :  { %2365 = vmatpush1.bf16.msra.mxu1 %v3977_v38  ;;  %v4067_v38 = vld [vmem:[#allocation10 + $0x190] ss:$8 sps:$4 sm:$0xff]  }
 0x248   :  { %2366 = vmatprep.subr.bf16.mxu1 %v3982_v39  ;;  %v4072_v39 = vld [vmem:[#allocation10 + $0x1a4] ss:$8 sps:$4 sm:$0xff]  }
 0x24b   :  { %2367 = vmatpush1.bf16.msra.mxu1 %v3980_v44  ;;  %v4075_v44 = vld [vmem:[#allocation10 + $0x1b4] ss:$8 sps:$4 sm:$0xff]  }
 0x24c   :  { %2368 = vmatprep.subr.bf16.mxu1 %v3985_v47  ;;  %v4073_v47 = vld [vmem:[#allocation10 + $0x1b0] ss:$8 sps:$4 sm:$0xff]  }
 0x24f   :  { %2369 = vmatpush1.bf16.msra.mxu1 %v3983_v7  ;;  %v4078_v7 = vld [vmem:[#allocation10 + $0x1c4] ss:$8 sps:$4 sm:$0xff]  }
 0x250   :  { %2370 = vmatprep.subr.bf16.mxu1 %v3988_v48  ;;  %v4076_v48 = vld [vmem:[#allocation10 + $0x1c0] ss:$8 sps:$4 sm:$0xff]  }
 0x253   :  { %2371 = vmatpush1.bf16.msra.mxu1 %v3986_v52  ;;  %v4081_v52 = vld [vmem:[#allocation10 + $0x1d4] ss:$8 sps:$4 sm:$0xff]  }
 0x254   :  { %2372 = vmatprep.subr.bf16.mxu1 %v3991_v54  ;;  %v4079_v54 = vld [vmem:[#allocation10 + $0x1d0] ss:$8 sps:$4 sm:$0xff]  }
 0x257   :  { %2373 = vmatpush1.bf16.msra.mxu1 %v3989_v55  ;;  %v4084_v55 = vld [vmem:[#allocation10 + $0x1e4] ss:$8 sps:$4 sm:$0xff]  }
 0x258   :  { %3538 = vmatprep.subr.bf16.mxu1 %v4088_v1 }
 0x25a   :  { %2375 = vmatmul.mubr.bf16.vlgmr.msra.gmra.mrb[4].mxu1 %v4512_v49 }
 0x25b   :  { %3539 = vmatpush3.bf16.msra.mxu1 %v4089_v2 }
 0x25c   :  { %3540 = vmatprep.subr.bf16.mxu1 %v4090_v3 }
 0x25f   :  { %3541 = vmatpush3.bf16.msra.mxu1 %v4091_v8  ;;  %v4100_v8 = vld [vmem:[#allocation11 + $0x70] sm:$0xff]  }
 0x260   :  { %3542 = vmatprep.subr.bf16.mxu1 %v4092_v46  ;;  %v4102_v46 = vld [vmem:[#allocation11 + $0x78] sm:$0xff]  }
 0x263   :  { %3543 = vmatpush3.bf16.msra.mxu1 %v4093_v21 }
 0x2b5   :  { %v2204_v61 = vpop.f32.mrb[16].mxu0 }
 0x2b6   :  { %v3560_v49 = vadd.f32 %v2204_v61, %v4517_v0  ;;  %v2206_v26 = vpop.f32.mrb[17].mxu0  ;;  %v4094_v0 = vld [vmem:[#allocation11 + $0x58] sm:$0xff]   ;;  %v2413_v61 = vcombine.high %v4530_v58, %v4530_v58 }
 0x2b7   :  { %v3561_v30 = vadd.f32 %v2206_v26, %v4519_v45  ;;  %v2208_v62 = vpop.f32.mrb[18].mxu0  ;;  %v4043_v45 = vld [vmem:[#allocation10 + $0x110] ss:$8 sps:$4 sm:$0xff]   ;;  %3544 = vmatprep.subr.bf16.mxu1 %v4094_v0  ;;  %v2437_v26 = vpack.i.b16 %v2414_v20, %v2414_v20 }
 0x2b8   :  { %v3562_v41 = vadd.f32 %v2208_v62, %v4521_v14  ;;  %v2210_v50 = vpop.f32.mrb[19].mxu0  ;;  %v4095_v14 = vld [vmem:[#allocation11 + $0x18] sm:$0xff]  }
 0x2b9   :  { %v3563_v10 = vadd.f32 %v2210_v50, %v4523_v16  ;;  %v4096_v16 = vld [vmem:[#allocation11 + $0x60] sm:$0xff]   ;;  %3545 = vmatpush3.bf16.msra.mxu1 %v4095_v14  ;;  %v2442_v50 = vrot.slane %v2437_v26, %v4433_v43 }
 0x2ba   :  { %v2385_v23 = vpack.c.bf16 %v3562_v41, %v3560_v49  ;;  %3546 = vmatprep.subr.bf16.mxu1 %v4096_v16  ;;  %v2430_v49 = vpack.i.b16 %v2413_v61, %v2413_v61 }
 0x2bb   :  { %v2386_v4 = vpack.c.bf16 %v3563_v10, %v3561_v30 }
 0x2bc   :  { %v2443_v5 = vadd.bf16 %v2421_v27, %v2385_v23  ;;  %v2435_v41 = vrot.slane %v2430_v49, %v4433_v43 }
 0x2bd   :  { %v2444_v6 = vadd.bf16 %v2428_v51, %v2386_v4  ;;  %3547 = vmatpush3.bf16.msra.mxu1 %v4097_v18 }
 0x2be   :  { %v2447_v40 = vmul.bf16 1009007652, %v2443_v5  ;;  %3548 = vmatprep.subr.bf16.mxu1 %v4098_v59 }
 0x2bf   :  { %v2448_v9 = vmul.bf16 1009007652, %v2444_v6 }
 0x2c0   :  { %v2451_v63 = vmax.bf16 %v2447_v40, %v2443_v5  ;;  %v4101_v40 = vld [vmem:[#allocation11 + $0x30] sm:$0xff]  }
 0x2c1   :  { %v2452_v11 = vmax.bf16 %v2448_v9, %v2444_v6  ;;  %v4099_v6 = vld [vmem:[#allocation11 + $0x28] sm:$0xff]   ;;  %v4103_v9 = vld [vmem:[#allocation11 + $0x38] sm:$0xff]  }
 0x2c2   :  { %3549 = vmatpush3.bf16.msra.mxu1 %v4099_v6 }
 0x2c3   :  { %2871 = vmatprep.mubr.bf16.mxu0 %v2452_v11  ;;  %3550 = vmatprep.subr.bf16.mxu1 %v4100_v8  ;;  %v3511_v11 = vld.sshfl [vmem:[%s4582_s6] sm:$0x11 pattern:$0x75316420] }
 0x2c4   :  { %2872 = vmatmul.mubr.bf16.vlgmr.msra.gmra.mrb[20].mxu0 %v2451_v63  ;;  %v2943_v21 = vrot.slane %v3511_v11, %v4428_v36 }
 0x2c5   :  { %2883 = vmatpush1.bf16.msra.mxu0 %v4040_v12  ;;  %v2936_v12 = vcombine.high %v3511_v11, %v3511_v11 }
 0x2c6   :  { %2884 = vmatprep.subr.bf16.mxu0 %v4045_v13  ;;  %3551 = vmatpush3.bf16.msra.mxu1 %v4101_v40  ;;  %v2952_v13 = vpack.i.b16 %v2943_v21, %v2943_v21 }
 0x2c7   :  { %3552 = vmatprep.subr.bf16.mxu1 %v4102_v46  ;;  %v2950_v63 = vrot.slane %v2936_v12, %v4428_v36 }
 0x2c9   :  { %2885 = vmatpush1.bf16.msra.mxu0 %v4043_v45  ;;  %v2959_v0 = vpack.i.b16 %v2950_v63, %v2950_v63 }
 0x2ca   :  { %2886 = vmatprep.subr.bf16.mxu0 %v4048_v15  ;;  %3553 = vmatpush3.bf16.msra.mxu1 %v4103_v9  ;;  %v2957_v15 = vrot.slane %v2952_v13, %v4433_v43 }
 0x2cd   :  { %2887 = vmatpush1.bf16.msra.mxu0 %v4046_v17  ;;  %v2964_v17 = vrot.slane %v2959_v0, %v4433_v43 }
 0x2ce   :  { %2888 = vmatprep.subr.bf16.mxu0 %v4051_v19 }
 0x2d1   :  { %2889 = vmatpush1.bf16.msra.mxu0 %v4049_v22 }
 0x2d2   :  { %2890 = vmatprep.subr.bf16.mxu0 %v4054_v24 }
 0x2d5   :  { %2891 = vmatpush1.bf16.msra.mxu0 %v4052_v25 }
 0x2d6   :  { %2892 = vmatprep.subr.bf16.mxu0 %v4057_v28 }
 0x2d9   :  { %2893 = vmatpush1.bf16.msra.mxu0 %v4055_v29 }
 0x2da   :  { %2894 = vmatprep.subr.bf16.mxu0 %v4060_v31 }
 0x2dd   :  { %2895 = vmatpush1.bf16.msra.mxu0 %v4058_v32 }
 0x2de   :  { %2896 = vmatprep.subr.bf16.mxu0 %v4063_v33 }
 0x2e1   :  { %2897 = vmatpush1.bf16.msra.mxu0 %v4061_v34 }
 0x2e2   :  { %2898 = vmatprep.subr.bf16.mxu0 %v4066_v35 }
 0x2e5   :  { %2899 = vmatpush1.bf16.msra.mxu0 %v4064_v37  ;;  %v3512_v37 = vld [vmem:[%s4584_s8] ss:$0 sm:$0xff] }
 0x2e6   :  { %2900 = vmatprep.subr.bf16.mxu0 %v4069_v53 }
 0x2e9   :  { %2901 = vmatpush1.bf16.msra.mxu0 %v4067_v38 }
 0x2ea   :  { %2902 = vmatprep.subr.bf16.mxu0 %v4072_v39 }
 0x2ed   :  { %2903 = vmatpush1.bf16.msra.mxu0 %v4070_v42 }
 0x2ee   :  { %2904 = vmatprep.subr.bf16.mxu0 %v4075_v44 }
 0x2f1   :  { %2905 = vmatpush1.bf16.msra.mxu0 %v4073_v47 }
 0x2f2   :  { %2906 = vmatprep.subr.bf16.mxu0 %v4078_v7 }
 0x2f5   :  { %2907 = vmatpush1.bf16.msra.mxu0 %v4076_v48 }
 0x2f6   :  { %2908 = vmatprep.subr.bf16.mxu0 %v4081_v52 }
 0x2f9   :  { %2909 = vmatpush1.bf16.msra.mxu0 %v4079_v54 }
 0x2fa   :  { %2910 = vmatprep.subr.bf16.mxu0 %v4084_v55 }
 0x2fd   :  { %2911 = vmatpush1.bf16.msra.mxu0 %v4082_v56 }
 0x2fe   :  { %2912 = vmatprep.subr.bf16.mxu0 %v4087_v57 }
 0x301   :  { %2913 = vmatpush1.bf16.msra.mxu0 %v4085_v60 }
 0x32d   :  { %v2376_v30 = vpop.f32.mrb[4].mxu1 }
 0x32e   :  { %v2378_v62 = vpop.f32.mrb[5].mxu1 }
 0x32f   :  { %v2380_v27 = vpop.f32.mrb[6].mxu1 }
 0x330   :  { %v2387_v10 = vpack.c.bf16 %v2380_v27, %v2376_v30  ;;  %v2382_v51 = vpop.f32.mrb[7].mxu1 }
 0x331   :  { %v2388_v23 = vpack.c.bf16 %v2382_v51, %v2378_v62 }
 0x332   :  { %v2445_v1 = vadd.bf16 %v2435_v41, %v2387_v10 }
 0x333   :  { %v2446_v2 = vadd.bf16 %v2442_v50, %v2388_v23 }
 0x334   :  { %v2449_v3 = vmul.bf16 1009007652, %v2445_v1 }
 0x335   :  { %v2450_v4 = vmul.bf16 1009007652, %v2446_v2 }
 0x336   :  { %v2453_v5 = vmax.bf16 %v2449_v3, %v2445_v1 }
 0x337   :  { %v2454_v58 = vmax.bf16 %v2450_v4, %v2446_v2 }
 0x339   :  { %2914 = vmatprep.mubr.bf16.mxu0 %v2454_v58 }
 0x33a   :  { %2915 = vmatmul.mubr.bf16.vlgmr.msra.gmra.mrb[20].mxu0 %v2453_v5 }
 0x40d   :  { %v2916_v45 = vpop.f32.mrb[20].mxu0 }
 0x40e   :  { %v2918_v14 = vpop.f32.mrb[21].mxu0 }
 0x40f   :  { %v2920_v16 = vpop.f32.mrb[22].mxu0 }
 0x410   :  { %v2925_v18 = vpack.c.bf16 %v2920_v16, %v2916_v45  ;;  %v2922_v19 = vpop.f32.mrb[23].mxu0 }
 0x411   :  { %v2926_v22 = vpack.c.bf16 %v2922_v19, %v2918_v14 }
 0x412   :  { %v2965_v24 = vadd.bf16 %v2957_v15, %v2925_v18 }
 0x413   :  { %v2966_v25 = vadd.bf16 %v2964_v17, %v2926_v22 }
 0x414   :  { %v2967_v28 = vmul.bf16 1009007652, %v2965_v24 }
 0x415   :  { %v2968_v29 = vmul.bf16 1009007652, %v2966_v25 }
 0x416   :  { %v2969_v32 = vmax.bf16 %v2967_v28, %v2965_v24 }
 0x417   :  { %v2970_v31 = vmax.bf16 %v2968_v29, %v2966_v25 }
 0x419   :  { %3138 = vmatprep.mubr.bf16.mxu1 %v2970_v31 }
 0x41a   :  { %3139 = vmatmul.mubr.bf16.vlgmr.msra.gmra.mrb[8].mxu1 %v2969_v32 }
 0x4ed   :  { %v3554_v36 = vpop.f32.mrb[8].mxu1 }
 0x4ee   :  { %v3555_v33 = vpop.f32.mrb[9].mxu1 }
 0x4ef   :  { %v3556_v34 = vadd.f32 %v3555_v33, %v3554_v36  ;;  %v3557_v35 = vpop.f32.mrb[10].mxu1 }
 0x4f0   :  { %v3558_v43 = vpop.f32.mrb[11].mxu1 }
 0x4f1   :  { %v3559_v53 = vadd.f32 %v3558_v43, %v3557_v35  ;;  %v3141_v38 = vadd.f32 %v3556_v34, %v3512_v37 }
 0x4f3   :  { %v3144_v39 = vadd.f32 %v3559_v53, %v3512_v37 }
 0x4f5   :  { %v3536_v42 = vpack.c.bf16 %v3144_v39, %v3141_v38 }
 0x4f7   :  { %3537 = vst [vmem:[#allocation13] sm:$0xff] %v3536_v42  }
 0x4f8   :  { %4247 = shalt.err (!%p4244_p10)
}
 0x4f9   :  { %s4248_s8 = scalar_lea.hbm %s4585_s9, 128 }
 0x4fa   :  { %p4249_p11 = scmp.ne.s32.totalorder %s4585_s9, %s4248_s8  ;;  %p4252_p12 = scmp.lt.u32.totalorder %s4248_s8, %s4585_s9 }
 0x4fc   :  { %p4254_p13 = pnand %p4252_p12, %p4249_p11 }
 0x4fe   :  { %4257 = shalt.err (!%p4254_p13)
}
 0x4ff   :  { %3168 = dma.vmem_to_hbm [thread:$0]  %s3163_s23, 128, %s4585_s9, [#allocation4], %s4275_s3, %s4275_s3, %s4276_s24  }
 0x500   :  { %4266 = dma.done.wait [#allocation4], 128  }
 0x501   :  { %4267 = vsyncadd [#allocation4], 4294967168 }
 0x502   :  { %3172 = vsyncpa [#allocation3], 1 }
 0x503   :  { %3173 = vsyncpa [#allocation6], 1 }
 0x504   :  { %3174 = vsyncpa [#allocation9], 1 }
 0x505   :  { %3175 = vsyncpa [#allocation12], 1 }
 0x506   :  { %3176 = vsyncpa [#allocation4], 1 }

</bundles_post_ra>
